<compile_context>
chip_gen: v7x
topology: tpu7x:2x2x1
jax: 0.10.0
libtpu: 0.0.40
codegen_flags: <defaults>
</compile_context>

<pallas_src>
import jax
import jax.numpy as jnp
from jax import lax
from jax.experimental import pallas as pl
from jax.experimental.pallas import tpu as pltpu

# config.config.* stand-ins (synthetic, small)
STATE_SIZE = 32                       # config.config.state_size
MAX_ACTION_NUM = 8                    # config.config.max_action_num
LAYER_SIZE = 2 * STATE_SIZE + 1       # state_size + 1 + state_size = 65
PADDED_LAYER_SIZE = 128               # head padded to a full lane width


def explorer_kernel(path_ref, state_ref, target_ref,
                    wih0_ref, whh0_ref, b0_ref,
                    wih1_ref, whh1_ref, b1_ref,
                    w1t_ref, w1s_ref, w1h_ref, b1l_ref,
                    w2_ref, b2l_ref, w3_ref, b3l_ref,
                    out_ref):
    TB, S = path_ref.shape            # time-major flattened path: (T*B, S)
    B = state_ref.shape[0]
    T = TB // B
    G = 4 * S

    whh0 = whh0_ref[...]              # (S, 4S)   g-cols pre-scaled by 2
    wih1 = wih1_ref[...]              # (S, 4S)   g-cols pre-scaled by 2
    whh1 = whh1_ref[...]              # (S, 4S)   g-cols pre-scaled by 2

    # --- Hoisted layer-0 input projection (time-major, no recurrent dep) -----
    # One (T*B, S) @ (S, 4S) GEMM with b0 folded in.  Row block t*B:(t+1)*B is
    # a contiguous sublane window read inside the loop.
    xg = (jnp.dot(path_ref[...], wih0_ref[...], preferred_element_type=jnp.float32)
          + jnp.broadcast_to(b0_ref[...], (TB, G)))                     # (T*B, 4S)

    # Hoist the (1,4S)->(B,4S) bias broadcast out of the loop (no CSE otherwise).
    b1b = jnp.broadcast_to(b1_ref[...], (B, G))

    def gate_nonlin(gates, c):
        # Single full-width EUP pass; the g-gate's pre-activation was scaled by
        # 2 in the weights, so tanh(x) = 2*sigmoid(2x) - 1 is just VPU work.
        sg = jax.nn.sigmoid(gates)                        # (B, 4S)
        i_g = sg[:, 0 * S:1 * S]
        f_g = sg[:, 1 * S:2 * S]
        g_g = 2.0 * sg[:, 2 * S:3 * S] - 1.0              # == tanh(original g pre-act)
        o_g = sg[:, 3 * S:4 * S]
        c_new = f_g * c + i_g * g_g
        h_new = o_g * jnp.tanh(c_new)
        return h_new, c_new

    z = jnp.zeros((B, S), jnp.float32)
    h0, c0, h1, c1 = z, z, z, z

    # --- Recurrence: fully unrolled (T static) --------------------------------
    # layer-0 step t+1 and layer-1 step t both depend only on h0[t]; leaving
    # them in one unrolled basic block lets LLO overlap their chains.
    for t in range(T):
        # LSTM layer 0: input term precomputed, only the hidden GEMM remains.
        gates0 = (xg[t * B:(t + 1) * B, :]
                  + jnp.dot(h0, whh0, preferred_element_type=jnp.float32))
        h0, c0 = gate_nonlin(gates0, c0)
        # LSTM layer 1: split-form gates (no per-step lane concatenate).
        gates1 = (jnp.dot(h0, wih1, preferred_element_type=jnp.float32)
                  + jnp.dot(h1, whh1, preferred_element_type=jnp.float32)
                  + b1b)
        h1, c1 = gate_nonlin(gates1, c1)

    # --- MLP head (lane-padded to 128): layer1 as a split matmul --------------
    # cat((target, state, h1)) @ W1 == target*W1_t + state@W1_s + h1@W1_h  (exact).
    y = (target_ref[...] * w1t_ref[...]                                   # (B,1)*(1,128)
         + jnp.dot(state_ref[...], w1s_ref[...], preferred_element_type=jnp.float32)
         + jnp.dot(h1, w1h_ref[...], preferred_element_type=jnp.float32)
         + b1l_ref[...])
    y = jnp.maximum(y, 0.0)                                               # relu(layer1)
    y = jnp.maximum(
        jnp.dot(y, w2_ref[...], preferred_element_type=jnp.float32) + b2l_ref[...],
        0.0)                                                              # relu(layer2)
    out_ref[...] = (jnp.dot(y, w3_ref[...], preferred_element_type=jnp.float32)
                    + b3l_ref[...])                                       # layer3


def prepare_params(params):
    """One-time param prep for the kernel:
      * scale the g-gate columns (2S:3S) of both LSTM layers by 2 so the kernel
        can use tanh(x) = 2*sigmoid(2x) - 1 with a single sigmoid pass,
      * zero-pad the MLP head from LAYER_SIZE=65 to 128 lanes (exact)."""
    S, A, P = STATE_SIZE, MAX_ACTION_NUM, PADDED_LAYER_SIZE

    gate_scale = jnp.concatenate(
        [jnp.ones((S,), jnp.float32), jnp.ones((S,), jnp.float32),
         2.0 * jnp.ones((S,), jnp.float32), jnp.ones((S,), jnp.float32)])

    def scale_g(w):
        return w * gate_scale[None, :]

    def pad(x, shape):
        return jnp.pad(x, [(0, s - d) for d, s in zip(x.shape, shape)])

    return {
        "wih0": scale_g(params["wih0"]), "whh0": scale_g(params["whh0"]),
        "b0": scale_g(params["b0"]),
        "wih1": scale_g(params["wih1"]), "whh1": scale_g(params["whh1"]),
        "b1": scale_g(params["b1"]),
        "w1t": pad(params["w1t"], (1, P)),
        "w1s": pad(params["w1s"], (S, P)),
        "w1h": pad(params["w1h"], (S, P)),
        "b1l": pad(params["b1l"], (1, P)),
        "w2":  pad(params["w2"], (P, P)),
        "b2l": pad(params["b2l"], (1, P)),
        "w3":  pad(params["w3"], (P, A)),
        "b3l": params["b3l"],
    }


def explorer_forward(state, path, target, kp):
    B, T, S = path.shape
    G, P, A = 4 * S, PADDED_LAYER_SIZE, MAX_ACTION_NUM

    # Time-major flatten in the wrapper (free in XLA); kernel reads contiguous
    # sublane windows per step instead of strided batch-major rows.
    path_tm = jnp.transpose(path, (1, 0, 2)).reshape(T * B, S)

    args = (path_tm, state, target,
            kp["wih0"], kp["whh0"], kp["b0"],
            kp["wih1"], kp["whh1"], kp["b1"],
            kp["w1t"], kp["w1s"], kp["w1h"], kp["b1l"],
            kp["w2"], kp["b2l"], kp["w3"], kp["b3l"])

    flops = (2 * T * B * S * G             # hoisted input projection
             + T * 3 * 2 * B * S * G       # per-step whh0 + wih1 + whh1 GEMMs
             + 2 * 2 * B * S * P           # head layer1 (state + h1 halves)
             + 2 * B * P * P               # head layer2
             + 2 * B * P * A)              # head layer3
    transcendentals = 2 * T * B * 5 * S    # sigmoid(4S) + tanh(S) per cell, 2 cells
    bytes_accessed = 4 * (sum(int(a.size) for a in args) + B * A)

    vmem = pl.BlockSpec(memory_space=pltpu.MemorySpace.VMEM)
    return pl.pallas_call(
        explorer_kernel,
        out_shape=jax.ShapeDtypeStruct((B, A), jnp.float32),
        in_specs=[vmem] * len(args),
        out_specs=vmem,
        cost_estimate=pl.CostEstimate(flops=flops,
                                      transcendentals=transcendentals,
                                      bytes_accessed=bytes_accessed),
    )(*args)


def explorer_ref(state, path, target, params):
    """Pure-JAX reference mirroring the PyTorch forward pass (unmodified params)."""
    B, T, S = path.shape

    def cell(x, h, c, wih, whh, b):
        g = x @ wih + h @ whh + b
        i = jax.nn.sigmoid(g[:, :S])
        f = jax.nn.sigmoid(g[:, S:2 * S])
        gg = jnp.tanh(g[:, 2 * S:3 * S])
        o = jax.nn.sigmoid(g[:, 3 * S:])
        c = f * c + i * gg
        h = o * jnp.tanh(c)
        return h, c

    z = jnp.zeros((B, S), jnp.float32)

    def step(carry, x_t):
        h0, c0, h1, c1 = carry
        h0, c0 = cell(x_t, h0, c0, params["wih0"], params["whh0"], params["b0"])
        h1, c1 = cell(h0, h1, c1, params["wih1"], params["whh1"], params["b1"])
        return (h0, c0, h1, c1), h1

    (_, _, h_top, _), _ = lax.scan(step, (z, z, z, z), jnp.transpose(path, (1, 0, 2)))
    x = jnp.concatenate([target, state, h_top], axis=-1)                 # (B, 65)
    w1 = jnp.concatenate([params["w1t"], params["w1s"], params["w1h"]], axis=0)
    x = jax.nn.relu(x @ w1 + params["b1l"])
    x = jax.nn.relu(x @ params["w2"] + params["b2l"])
    return x @ params["w3"] + params["b3l"]


def make_params(key):
    S, L, A = STATE_SIZE, LAYER_SIZE, MAX_ACTION_NUM
    names_shapes = [
        ("wih0", (S, 4 * S)), ("whh0", (S, 4 * S)), ("b0", (1, 4 * S)),
        ("wih1", (S, 4 * S)), ("whh1", (S, 4 * S)), ("b1", (1, 4 * S)),
        ("w1t", (1, L)), ("w1s", (S, L)), ("w1h", (S, L)), ("b1l", (1, L)),
        ("w2", (L, L)), ("b2l", (1, L)),
        ("w3", (L, A)), ("b3l", (1, A)),
    ]
    keys = jax.random.split(key, len(names_shapes))
    return {name: jax.random.uniform(k, shape, jnp.float32, -0.1, 0.1)
            for k, (name, shape) in zip(keys, names_shapes)}


if __name__ == "__main__":
    # B=8 fills all 8 sublanes of every VPU/EUP op and gives the MXU a less
    # starved M dimension; T*B=64 rows keeps the hoisted GEMM one clean slab.
    B, T, S = 8, 8, STATE_SIZE
    root = jax.random.PRNGKey(0)
    k_state, k_path, k_target, k_params = jax.random.split(root, 4)

    state = jax.random.normal(k_state, (B, S), jnp.float32)
    path = jax.random.normal(k_path, (B, T, S), jnp.float32)
    target = jax.random.normal(k_target, (B, 1), jnp.float32)
    params = make_params(k_params)
    kparams = prepare_params(params)     # one-time weight scale/fuse/pad (outside the hot path)

    out = jax.block_until_ready(explorer_forward(state, path, target, kparams))
    ref = jax.block_until_ready(explorer_ref(state, path, target, params))

    assert out.shape == (B, MAX_ACTION_NUM)
    assert jnp.allclose(out, ref, rtol=1e-3, atol=1e-3), (out, ref)
    print("KERNEL_OK")
</pallas_src>

<mosaic_0001>
module attributes {stable_mosaic.version = 11 : i64} {
  func.func @explorer_kernel(%arg0: memref<64x32xf32, #tpu.memory_space<vmem>>, %arg1: memref<8x32xf32, #tpu.memory_space<vmem>>, %arg2: memref<8x1xf32, #tpu.memory_space<vmem>>, %arg3: memref<32x128xf32, #tpu.memory_space<vmem>>, %arg4: memref<32x128xf32, #tpu.memory_space<vmem>>, %arg5: memref<1x128xf32, #tpu.memory_space<vmem>>, %arg6: memref<32x128xf32, #tpu.memory_space<vmem>>, %arg7: memref<32x128xf32, #tpu.memory_space<vmem>>, %arg8: memref<1x128xf32, #tpu.memory_space<vmem>>, %arg9: memref<1x128xf32, #tpu.memory_space<vmem>>, %arg10: memref<32x128xf32, #tpu.memory_space<vmem>>, %arg11: memref<32x128xf32, #tpu.memory_space<vmem>>, %arg12: memref<1x128xf32, #tpu.memory_space<vmem>>, %arg13: memref<128x128xf32, #tpu.memory_space<vmem>>, %arg14: memref<1x128xf32, #tpu.memory_space<vmem>>, %arg15: memref<128x8xf32, #tpu.memory_space<vmem>>, %arg16: memref<1x8xf32, #tpu.memory_space<vmem>>, %arg17: memref<8x8xf32, #tpu.memory_space<vmem>>) attributes {dimension_semantics = [], scalar_prefetch = 0 : i64, scratch_operands = 0 : i64, tpu.core_type = #tpu.core_type<tc>} {
    %c0 = arith.constant 0 : index
    %c0_0 = arith.constant 0 : index
    %0 = vector.load %arg4[%c0, %c0_0] : memref<32x128xf32, #tpu.memory_space<vmem>>, vector<32x128xf32>
    %c0_1 = arith.constant 0 : index
    %c0_2 = arith.constant 0 : index
    %1 = vector.load %arg6[%c0_1, %c0_2] : memref<32x128xf32, #tpu.memory_space<vmem>>, vector<32x128xf32>
    %c0_3 = arith.constant 0 : index
    %c0_4 = arith.constant 0 : index
    %2 = vector.load %arg7[%c0_3, %c0_4] : memref<32x128xf32, #tpu.memory_space<vmem>>, vector<32x128xf32>
    %c0_5 = arith.constant 0 : index
    %c0_6 = arith.constant 0 : index
    %3 = vector.load %arg0[%c0_5, %c0_6] : memref<64x32xf32, #tpu.memory_space<vmem>>, vector<64x32xf32>
    %c0_7 = arith.constant 0 : index
    %c0_8 = arith.constant 0 : index
    %4 = vector.load %arg3[%c0_7, %c0_8] : memref<32x128xf32, #tpu.memory_space<vmem>>, vector<32x128xf32>
    %cst = arith.constant dense<0.000000e+00> : vector<64x128xf32>
    %5 = tpu.matmul %3, %4, %cst {dimension_numbers = #tpu.dot_dimension_numbers<[1], [0], [0], [1], [0, 0, 1, 1], [], []>} : vector<64x32xf32>, vector<32x128xf32>, vector<64x128xf32> -> vector<64x128xf32>
    %c0_9 = arith.constant 0 : index
    %c0_10 = arith.constant 0 : index
    %6 = vector.load %arg5[%c0_9, %c0_10] : memref<1x128xf32, #tpu.memory_space<vmem>>, vector<1x128xf32>
    %7 = vector.shape_cast %6 : vector<1x128xf32> to vector<1x128xf32>
    %8 = vector.broadcast %7 : vector<1x128xf32> to vector<64x128xf32>
    %9 = arith.addf %5, %8 : vector<64x128xf32>
    %c0_11 = arith.constant 0 : index
    %c0_12 = arith.constant 0 : index
    %10 = vector.load %arg8[%c0_11, %c0_12] : memref<1x128xf32, #tpu.memory_space<vmem>>, vector<1x128xf32>
    %11 = vector.shape_cast %10 : vector<1x128xf32> to vector<1x128xf32>
    %12 = vector.broadcast %11 : vector<1x128xf32> to vector<8x128xf32>
    %cst_13 = arith.constant 0.000000e+00 : f32
    %13 = vector.broadcast %cst_13 : f32 to vector<8x32xf32>
    %14 = vector.extract_strided_slice %9 {offsets = [0, 0], sizes = [8, 128], strides = [1, 1]} : vector<64x128xf32> to vector<8x128xf32>
    %cst_14 = arith.constant dense<0.000000e+00> : vector<8x128xf32>
    %15 = tpu.matmul %13, %0, %cst_14 {dimension_numbers = #tpu.dot_dimension_numbers<[1], [0], [0], [1], [0, 0, 1, 1], [], []>} : vector<8x32xf32>, vector<32x128xf32>, vector<8x128xf32> -> vector<8x128xf32>
    %16 = arith.addf %14, %15 : vector<8x128xf32>
    %17 = arith.negf %16 : vector<8x128xf32>
    %18 = math.exp %17 : vector<8x128xf32>
    %cst_15 = arith.constant 1.000000e+00 : f32
    %19 = vector.broadcast %cst_15 : f32 to vector<8x128xf32>
    %20 = arith.addf %19, %18 : vector<8x128xf32>
    %21 = arith.divf %19, %20 : vector<8x128xf32>
    %22 = vector.extract_strided_slice %21 {offsets = [0, 0], sizes = [8, 32], strides = [1, 1]} : vector<8x128xf32> to vector<8x32xf32>
    %23 = vector.extract_strided_slice %21 {offsets = [0, 32], sizes = [8, 32], strides = [1, 1]} : vector<8x128xf32> to vector<8x32xf32>
    %24 = vector.extract_strided_slice %21 {offsets = [0, 64], sizes = [8, 32], strides = [1, 1]} : vector<8x128xf32> to vector<8x32xf32>
    %cst_16 = arith.constant 2.000000e+00 : f32
    %25 = vector.broadcast %cst_16 : f32 to vector<8x32xf32>
    %26 = arith.mulf %25, %24 : vector<8x32xf32>
    %cst_17 = arith.constant 1.000000e+00 : f32
    %27 = vector.broadcast %cst_17 : f32 to vector<8x32xf32>
    %28 = arith.subf %26, %27 : vector<8x32xf32>
    %29 = vector.extract_strided_slice %21 {offsets = [0, 96], sizes = [8, 32], strides = [1, 1]} : vector<8x128xf32> to vector<8x32xf32>
    %30 = arith.mulf %23, %13 : vector<8x32xf32>
    %31 = arith.mulf %22, %28 : vector<8x32xf32>
    %32 = arith.addf %30, %31 : vector<8x32xf32>
    %33 = math.tanh %32 : vector<8x32xf32>
    %34 = arith.mulf %29, %33 : vector<8x32xf32>
    %cst_18 = arith.constant dense<0.000000e+00> : vector<8x128xf32>
    %35 = tpu.matmul %34, %1, %cst_18 {dimension_numbers = #tpu.dot_dimension_numbers<[1], [0], [0], [1], [0, 0, 1, 1], [], []>} : vector<8x32xf32>, vector<32x128xf32>, vector<8x128xf32> -> vector<8x128xf32>
    %cst_19 = arith.constant dense<0.000000e+00> : vector<8x128xf32>
    %36 = tpu.matmul %13, %2, %cst_19 {dimension_numbers = #tpu.dot_dimension_numbers<[1], [0], [0], [1], [0, 0, 1, 1], [], []>} : vector<8x32xf32>, vector<32x128xf32>, vector<8x128xf32> -> vector<8x128xf32>
    %37 = arith.addf %35, %36 : vector<8x128xf32>
    %38 = arith.addf %37, %12 : vector<8x128xf32>
    %39 = arith.negf %38 : vector<8x128xf32>
    %40 = math.exp %39 : vector<8x128xf32>
    %cst_20 = arith.constant 1.000000e+00 : f32
    %41 = vector.broadcast %cst_20 : f32 to vector<8x128xf32>
    %42 = arith.addf %41, %40 : vector<8x128xf32>
    %43 = arith.divf %41, %42 : vector<8x128xf32>
    %44 = vector.extract_strided_slice %43 {offsets = [0, 0], sizes = [8, 32], strides = [1, 1]} : vector<8x128xf32> to vector<8x32xf32>
    %45 = vector.extract_strided_slice %43 {offsets = [0, 32], sizes = [8, 32], strides = [1, 1]} : vector<8x128xf32> to vector<8x32xf32>
    %46 = vector.extract_strided_slice %43 {offsets = [0, 64], sizes = [8, 32], strides = [1, 1]} : vector<8x128xf32> to vector<8x32xf32>
    %cst_21 = arith.constant 2.000000e+00 : f32
    %47 = vector.broadcast %cst_21 : f32 to vector<8x32xf32>
    %48 = arith.mulf %47, %46 : vector<8x32xf32>
    %cst_22 = arith.constant 1.000000e+00 : f32
    %49 = vector.broadcast %cst_22 : f32 to vector<8x32xf32>
    %50 = arith.subf %48, %49 : vector<8x32xf32>
    %51 = vector.extract_strided_slice %43 {offsets = [0, 96], sizes = [8, 32], strides = [1, 1]} : vector<8x128xf32> to vector<8x32xf32>
    %52 = arith.mulf %45, %13 : vector<8x32xf32>
    %53 = arith.mulf %44, %50 : vector<8x32xf32>
    %54 = arith.addf %52, %53 : vector<8x32xf32>
    %55 = math.tanh %54 : vector<8x32xf32>
    %56 = arith.mulf %51, %55 : vector<8x32xf32>
    %57 = vector.extract_strided_slice %9 {offsets = [8, 0], sizes = [8, 128], strides = [1, 1]} : vector<64x128xf32> to vector<8x128xf32>
    %cst_23 = arith.constant dense<0.000000e+00> : vector<8x128xf32>
    %58 = tpu.matmul %34, %0, %cst_23 {dimension_numbers = #tpu.dot_dimension_numbers<[1], [0], [0], [1], [0, 0, 1, 1], [], []>} : vector<8x32xf32>, vector<32x128xf32>, vector<8x128xf32> -> vector<8x128xf32>
    %59 = arith.addf %57, %58 : vector<8x128xf32>
    %60 = arith.negf %59 : vector<8x128xf32>
    %61 = math.exp %60 : vector<8x128xf32>
    %cst_24 = arith.constant 1.000000e+00 : f32
    %62 = vector.broadcast %cst_24 : f32 to vector<8x128xf32>
    %63 = arith.addf %62, %61 : vector<8x128xf32>
    %64 = arith.divf %62, %63 : vector<8x128xf32>
    %65 = vector.extract_strided_slice %64 {offsets = [0, 0], sizes = [8, 32], strides = [1, 1]} : vector<8x128xf32> to vector<8x32xf32>
    %66 = vector.extract_strided_slice %64 {offsets = [0, 32], sizes = [8, 32], strides = [1, 1]} : vector<8x128xf32> to vector<8x32xf32>
    %67 = vector.extract_strided_slice %64 {offsets = [0, 64], sizes = [8, 32], strides = [1, 1]} : vector<8x128xf32> to vector<8x32xf32>
    %cst_25 = arith.constant 2.000000e+00 : f32
    %68 = vector.broadcast %cst_25 : f32 to vector<8x32xf32>
    %69 = arith.mulf %68, %67 : vector<8x32xf32>
    %cst_26 = arith.constant 1.000000e+00 : f32
    %70 = vector.broadcast %cst_26 : f32 to vector<8x32xf32>
    %71 = arith.subf %69, %70 : vector<8x32xf32>
    %72 = vector.extract_strided_slice %64 {offsets = [0, 96], sizes = [8, 32], strides = [1, 1]} : vector<8x128xf32> to vector<8x32xf32>
    %73 = arith.mulf %66, %32 : vector<8x32xf32>
    %74 = arith.mulf %65, %71 : vector<8x32xf32>
    %75 = arith.addf %73, %74 : vector<8x32xf32>
    %76 = math.tanh %75 : vector<8x32xf32>
    %77 = arith.mulf %72, %76 : vector<8x32xf32>
    %cst_27 = arith.constant dense<0.000000e+00> : vector<8x128xf32>
    %78 = tpu.matmul %77, %1, %cst_27 {dimension_numbers = #tpu.dot_dimension_numbers<[1], [0], [0], [1], [0, 0, 1, 1], [], []>} : vector<8x32xf32>, vector<32x128xf32>, vector<8x128xf32> -> vector<8x128xf32>
    %cst_28 = arith.constant dense<0.000000e+00> : vector<8x128xf32>
    %79 = tpu.matmul %56, %2, %cst_28 {dimension_numbers = #tpu.dot_dimension_numbers<[1], [0], [0], [1], [0, 0, 1, 1], [], []>} : vector<8x32xf32>, vector<32x128xf32>, vector<8x128xf32> -> vector<8x128xf32>
    %80 = arith.addf %78, %79 : vector<8x128xf32>
    %81 = arith.addf %80, %12 : vector<8x128xf32>
    %82 = arith.negf %81 : vector<8x128xf32>
    %83 = math.exp %82 : vector<8x128xf32>
    %cst_29 = arith.constant 1.000000e+00 : f32
    %84 = vector.broadcast %cst_29 : f32 to vector<8x128xf32>
    %85 = arith.addf %84, %83 : vector<8x128xf32>
    %86 = arith.divf %84, %85 : vector<8x128xf32>
    %87 = vector.extract_strided_slice %86 {offsets = [0, 0], sizes = [8, 32], strides = [1, 1]} : vector<8x128xf32> to vector<8x32xf32>
    %88 = vector.extract_strided_slice %86 {offsets = [0, 32], sizes = [8, 32], strides = [1, 1]} : vector<8x128xf32> to vector<8x32xf32>
    %89 = vector.extract_strided_slice %86 {offsets = [0, 64], sizes = [8, 32], strides = [1, 1]} : vector<8x128xf32> to vector<8x32xf32>
    %cst_30 = arith.constant 2.000000e+00 : f32
    %90 = vector.broadcast %cst_30 : f32 to vector<8x32xf32>
    %91 = arith.mulf %90, %89 : vector<8x32xf32>
    %cst_31 = arith.constant 1.000000e+00 : f32
    %92 = vector.broadcast %cst_31 : f32 to vector<8x32xf32>
    %93 = arith.subf %91, %92 : vector<8x32xf32>
    %94 = vector.extract_strided_slice %86 {offsets = [0, 96], sizes = [8, 32], strides = [1, 1]} : vector<8x128xf32> to vector<8x32xf32>
    %95 = arith.mulf %88, %54 : vector<8x32xf32>
    %96 = arith.mulf %87, %93 : vector<8x32xf32>
    %97 = arith.addf %95, %96 : vector<8x32xf32>
    %98 = math.tanh %97 : vector<8x32xf32>
    %99 = arith.mulf %94, %98 : vector<8x32xf32>
    %100 = vector.extract_strided_slice %9 {offsets = [16, 0], sizes = [8, 128], strides = [1, 1]} : vector<64x128xf32> to vector<8x128xf32>
    %cst_32 = arith.constant dense<0.000000e+00> : vector<8x128xf32>
    %101 = tpu.matmul %77, %0, %cst_32 {dimension_numbers = #tpu.dot_dimension_numbers<[1], [0], [0], [1], [0, 0, 1, 1], [], []>} : vector<8x32xf32>, vector<32x128xf32>, vector<8x128xf32> -> vector<8x128xf32>
    %102 = arith.addf %100, %101 : vector<8x128xf32>
    %103 = arith.negf %102 : vector<8x128xf32>
    %104 = math.exp %103 : vector<8x128xf32>
    %cst_33 = arith.constant 1.000000e+00 : f32
    %105 = vector.broadcast %cst_33 : f32 to vector<8x128xf32>
    %106 = arith.addf %105, %104 : vector<8x128xf32>
    %107 = arith.divf %105, %106 : vector<8x128xf32>
    %108 = vector.extract_strided_slice %107 {offsets = [0, 0], sizes = [8, 32], strides = [1, 1]} : vector<8x128xf32> to vector<8x32xf32>
    %109 = vector.extract_strided_slice %107 {offsets = [0, 32], sizes = [8, 32], strides = [1, 1]} : vector<8x128xf32> to vector<8x32xf32>
    %110 = vector.extract_strided_slice %107 {offsets = [0, 64], sizes = [8, 32], strides = [1, 1]} : vector<8x128xf32> to vector<8x32xf32>
    %cst_34 = arith.constant 2.000000e+00 : f32
    %111 = vector.broadcast %cst_34 : f32 to vector<8x32xf32>
    %112 = arith.mulf %111, %110 : vector<8x32xf32>
    %cst_35 = arith.constant 1.000000e+00 : f32
    %113 = vector.broadcast %cst_35 : f32 to vector<8x32xf32>
    %114 = arith.subf %112, %113 : vector<8x32xf32>
    %115 = vector.extract_strided_slice %107 {offsets = [0, 96], sizes = [8, 32], strides = [1, 1]} : vector<8x128xf32> to vector<8x32xf32>
    %116 = arith.mulf %109, %75 : vector<8x32xf32>
    %117 = arith.mulf %108, %114 : vector<8x32xf32>
    %118 = arith.addf %116, %117 : vector<8x32xf32>
    %119 = math.tanh %118 : vector<8x32xf32>
    %120 = arith.mulf %115, %119 : vector<8x32xf32>
    %cst_36 = arith.constant dense<0.000000e+00> : vector<8x128xf32>
    %121 = tpu.matmul %120, %1, %cst_36 {dimension_numbers = #tpu.dot_dimension_numbers<[1], [0], [0], [1], [0, 0, 1, 1], [], []>} : vector<8x32xf32>, vector<32x128xf32>, vector<8x128xf32> -> vector<8x128xf32>
    %cst_37 = arith.constant dense<0.000000e+00> : vector<8x128xf32>
    %122 = tpu.matmul %99, %2, %cst_37 {dimension_numbers = #tpu.dot_dimension_numbers<[1], [0], [0], [1], [0, 0, 1, 1], [], []>} : vector<8x32xf32>, vector<32x128xf32>, vector<8x128xf32> -> vector<8x128xf32>
    %123 = arith.addf %121, %122 : vector<8x128xf32>
    %124 = arith.addf %123, %12 : vector<8x128xf32>
    %125 = arith.negf %124 : vector<8x128xf32>
    %126 = math.exp %125 : vector<8x128xf32>
    %cst_38 = arith.constant 1.000000e+00 : f32
    %127 = vector.broadcast %cst_38 : f32 to vector<8x128xf32>
    %128 = arith.addf %127, %126 : vector<8x128xf32>
    %129 = arith.divf %127, %128 : vector<8x128xf32>
    %130 = vector.extract_strided_slice %129 {offsets = [0, 0], sizes = [8, 32], strides = [1, 1]} : vector<8x128xf32> to vector<8x32xf32>
    %131 = vector.extract_strided_slice %129 {offsets = [0, 32], sizes = [8, 32], strides = [1, 1]} : vector<8x128xf32> to vector<8x32xf32>
    %132 = vector.extract_strided_slice %129 {offsets = [0, 64], sizes = [8, 32], strides = [1, 1]} : vector<8x128xf32> to vector<8x32xf32>
    %cst_39 = arith.constant 2.000000e+00 : f32
    %133 = vector.broadcast %cst_39 : f32 to vector<8x32xf32>
    %134 = arith.mulf %133, %132 : vector<8x32xf32>
    %cst_40 = arith.constant 1.000000e+00 : f32
    %135 = vector.broadcast %cst_40 : f32 to vector<8x32xf32>
    %136 = arith.subf %134, %135 : vector<8x32xf32>
    %137 = vector.extract_strided_slice %129 {offsets = [0, 96], sizes = [8, 32], strides = [1, 1]} : vector<8x128xf32> to vector<8x32xf32>
    %138 = arith.mulf %131, %97 : vector<8x32xf32>
    %139 = arith.mulf %130, %136 : vector<8x32xf32>
    %140 = arith.addf %138, %139 : vector<8x32xf32>
    %141 = math.tanh %140 : vector<8x32xf32>
    %142 = arith.mulf %137, %141 : vector<8x32xf32>
    %143 = vector.extract_strided_slice %9 {offsets = [24, 0], sizes = [8, 128], strides = [1, 1]} : vector<64x128xf32> to vector<8x128xf32>
    %cst_41 = arith.constant dense<0.000000e+00> : vector<8x128xf32>
    %144 = tpu.matmul %120, %0, %cst_41 {dimension_numbers = #tpu.dot_dimension_numbers<[1], [0], [0], [1], [0, 0, 1, 1], [], []>} : vector<8x32xf32>, vector<32x128xf32>, vector<8x128xf32> -> vector<8x128xf32>
    %145 = arith.addf %143, %144 : vector<8x128xf32>
    %146 = arith.negf %145 : vector<8x128xf32>
    %147 = math.exp %146 : vector<8x128xf32>
    %cst_42 = arith.constant 1.000000e+00 : f32
    %148 = vector.broadcast %cst_42 : f32 to vector<8x128xf32>
    %149 = arith.addf %148, %147 : vector<8x128xf32>
    %150 = arith.divf %148, %149 : vector<8x128xf32>
    %151 = vector.extract_strided_slice %150 {offsets = [0, 0], sizes = [8, 32], strides = [1, 1]} : vector<8x128xf32> to vector<8x32xf32>
    %152 = vector.extract_strided_slice %150 {offsets = [0, 32], sizes = [8, 32], strides = [1, 1]} : vector<8x128xf32> to vector<8x32xf32>
    %153 = vector.extract_strided_slice %150 {offsets = [0, 64], sizes = [8, 32], strides = [1, 1]} : vector<8x128xf32> to vector<8x32xf32>
    %cst_43 = arith.constant 2.000000e+00 : f32
    %154 = vector.broadcast %cst_43 : f32 to vector<8x32xf32>
    %155 = arith.mulf %154, %153 : vector<8x32xf32>
    %cst_44 = arith.constant 1.000000e+00 : f32
    %156 = vector.broadcast %cst_44 : f32 to vector<8x32xf32>
    %157 = arith.subf %155, %156 : vector<8x32xf32>
    %158 = vector.extract_strided_slice %150 {offsets = [0, 96], sizes = [8, 32], strides = [1, 1]} : vector<8x128xf32> to vector<8x32xf32>
    %159 = arith.mulf %152, %118 : vector<8x32xf32>
    %160 = arith.mulf %151, %157 : vector<8x32xf32>
    %161 = arith.addf %159, %160 : vector<8x32xf32>
    %162 = math.tanh %161 : vector<8x32xf32>
    %163 = arith.mulf %158, %162 : vector<8x32xf32>
    %cst_45 = arith.constant dense<0.000000e+00> : vector<8x128xf32>
    %164 = tpu.matmul %163, %1, %cst_45 {dimension_numbers = #tpu.dot_dimension_numbers<[1], [0], [0], [1], [0, 0, 1, 1], [], []>} : vector<8x32xf32>, vector<32x128xf32>, vector<8x128xf32> -> vector<8x128xf32>
    %cst_46 = arith.constant dense<0.000000e+00> : vector<8x128xf32>
    %165 = tpu.matmul %142, %2, %cst_46 {dimension_numbers = #tpu.dot_dimension_numbers<[1], [0], [0], [1], [0, 0, 1, 1], [], []>} : vector<8x32xf32>, vector<32x128xf32>, vector<8x128xf32> -> vector<8x128xf32>
    %166 = arith.addf %164, %165 : vector<8x128xf32>
    %167 = arith.addf %166, %12 : vector<8x128xf32>
    %168 = arith.negf %167 : vector<8x128xf32>
    %169 = math.exp %168 : vector<8x128xf32>
    %cst_47 = arith.constant 1.000000e+00 : f32
    %170 = vector.broadcast %cst_47 : f32 to vector<8x128xf32>
    %171 = arith.addf %170, %169 : vector<8x128xf32>
    %172 = arith.divf %170, %171 : vector<8x128xf32>
    %173 = vector.extract_strided_slice %172 {offsets = [0, 0], sizes = [8, 32], strides = [1, 1]} : vector<8x128xf32> to vector<8x32xf32>
    %174 = vector.extract_strided_slice %172 {offsets = [0, 32], sizes = [8, 32], strides = [1, 1]} : vector<8x128xf32> to vector<8x32xf32>
    %175 = vector.extract_strided_slice %172 {offsets = [0, 64], sizes = [8, 32], strides = [1, 1]} : vector<8x128xf32> to vector<8x32xf32>
    %cst_48 = arith.constant 2.000000e+00 : f32
    %176 = vector.broadcast %cst_48 : f32 to vector<8x32xf32>
    %177 = arith.mulf %176, %175 : vector<8x32xf32>
    %cst_49 = arith.constant 1.000000e+00 : f32
    %178 = vector.broadcast %cst_49 : f32 to vector<8x32xf32>
    %179 = arith.subf %177, %178 : vector<8x32xf32>
    %180 = vector.extract_strided_slice %172 {offsets = [0, 96], sizes = [8, 32], strides = [1, 1]} : vector<8x128xf32> to vector<8x32xf32>
    %181 = arith.mulf %174, %140 : vector<8x32xf32>
    %182 = arith.mulf %173, %179 : vector<8x32xf32>
    %183 = arith.addf %181, %182 : vector<8x32xf32>
    %184 = math.tanh %183 : vector<8x32xf32>
    %185 = arith.mulf %180, %184 : vector<8x32xf32>
    %186 = vector.extract_strided_slice %9 {offsets = [32, 0], sizes = [8, 128], strides = [1, 1]} : vector<64x128xf32> to vector<8x128xf32>
    %cst_50 = arith.constant dense<0.000000e+00> : vector<8x128xf32>
    %187 = tpu.matmul %163, %0, %cst_50 {dimension_numbers = #tpu.dot_dimension_numbers<[1], [0], [0], [1], [0, 0, 1, 1], [], []>} : vector<8x32xf32>, vector<32x128xf32>, vector<8x128xf32> -> vector<8x128xf32>
    %188 = arith.addf %186, %187 : vector<8x128xf32>
    %189 = arith.negf %188 : vector<8x128xf32>
    %190 = math.exp %189 : vector<8x128xf32>
    %cst_51 = arith.constant 1.000000e+00 : f32
    %191 = vector.broadcast %cst_51 : f32 to vector<8x128xf32>
    %192 = arith.addf %191, %190 : vector<8x128xf32>
    %193 = arith.divf %191, %192 : vector<8x128xf32>
    %194 = vector.extract_strided_slice %193 {offsets = [0, 0], sizes = [8, 32], strides = [1, 1]} : vector<8x128xf32> to vector<8x32xf32>
    %195 = vector.extract_strided_slice %193 {offsets = [0, 32], sizes = [8, 32], strides = [1, 1]} : vector<8x128xf32> to vector<8x32xf32>
    %196 = vector.extract_strided_slice %193 {offsets = [0, 64], sizes = [8, 32], strides = [1, 1]} : vector<8x128xf32> to vector<8x32xf32>
    %cst_52 = arith.constant 2.000000e+00 : f32
    %197 = vector.broadcast %cst_52 : f32 to vector<8x32xf32>
    %198 = arith.mulf %197, %196 : vector<8x32xf32>
    %cst_53 = arith.constant 1.000000e+00 : f32
    %199 = vector.broadcast %cst_53 : f32 to vector<8x32xf32>
    %200 = arith.subf %198, %199 : vector<8x32xf32>
    %201 = vector.extract_strided_slice %193 {offsets = [0, 96], sizes = [8, 32], strides = [1, 1]} : vector<8x128xf32> to vector<8x32xf32>
    %202 = arith.mulf %195, %161 : vector<8x32xf32>
    %203 = arith.mulf %194, %200 : vector<8x32xf32>
    %204 = arith.addf %202, %203 : vector<8x32xf32>
    %205 = math.tanh %204 : vector<8x32xf32>
    %206 = arith.mulf %201, %205 : vector<8x32xf32>
    %cst_54 = arith.constant dense<0.000000e+00> : vector<8x128xf32>
    %207 = tpu.matmul %206, %1, %cst_54 {dimension_numbers = #tpu.dot_dimension_numbers<[1], [0], [0], [1], [0, 0, 1, 1], [], []>} : vector<8x32xf32>, vector<32x128xf32>, vector<8x128xf32> -> vector<8x128xf32>
    %cst_55 = arith.constant dense<0.000000e+00> : vector<8x128xf32>
    %208 = tpu.matmul %185, %2, %cst_55 {dimension_numbers = #tpu.dot_dimension_numbers<[1], [0], [0], [1], [0, 0, 1, 1], [], []>} : vector<8x32xf32>, vector<32x128xf32>, vector<8x128xf32> -> vector<8x128xf32>
    %209 = arith.addf %207, %208 : vector<8x128xf32>
    %210 = arith.addf %209, %12 : vector<8x128xf32>
    %211 = arith.negf %210 : vector<8x128xf32>
    %212 = math.exp %211 : vector<8x128xf32>
    %cst_56 = arith.constant 1.000000e+00 : f32
    %213 = vector.broadcast %cst_56 : f32 to vector<8x128xf32>
    %214 = arith.addf %213, %212 : vector<8x128xf32>
    %215 = arith.divf %213, %214 : vector<8x128xf32>
    %216 = vector.extract_strided_slice %215 {offsets = [0, 0], sizes = [8, 32], strides = [1, 1]} : vector<8x128xf32> to vector<8x32xf32>
    %217 = vector.extract_strided_slice %215 {offsets = [0, 32], sizes = [8, 32], strides = [1, 1]} : vector<8x128xf32> to vector<8x32xf32>
    %218 = vector.extract_strided_slice %215 {offsets = [0, 64], sizes = [8, 32], strides = [1, 1]} : vector<8x128xf32> to vector<8x32xf32>
    %cst_57 = arith.constant 2.000000e+00 : f32
    %219 = vector.broadcast %cst_57 : f32 to vector<8x32xf32>
    %220 = arith.mulf %219, %218 : vector<8x32xf32>
    %cst_58 = arith.constant 1.000000e+00 : f32
    %221 = vector.broadcast %cst_58 : f32 to vector<8x32xf32>
    %222 = arith.subf %220, %221 : vector<8x32xf32>
    %223 = vector.extract_strided_slice %215 {offsets = [0, 96], sizes = [8, 32], strides = [1, 1]} : vector<8x128xf32> to vector<8x32xf32>
    %224 = arith.mulf %217, %183 : vector<8x32xf32>
    %225 = arith.mulf %216, %222 : vector<8x32xf32>
    %226 = arith.addf %224, %225 : vector<8x32xf32>
    %227 = math.tanh %226 : vector<8x32xf32>
    %228 = arith.mulf %223, %227 : vector<8x32xf32>
    %229 = vector.extract_strided_slice %9 {offsets = [40, 0], sizes = [8, 128], strides = [1, 1]} : vector<64x128xf32> to vector<8x128xf32>
    %cst_59 = arith.constant dense<0.000000e+00> : vector<8x128xf32>
    %230 = tpu.matmul %206, %0, %cst_59 {dimension_numbers = #tpu.dot_dimension_numbers<[1], [0], [0], [1], [0, 0, 1, 1], [], []>} : vector<8x32xf32>, vector<32x128xf32>, vector<8x128xf32> -> vector<8x128xf32>
    %231 = arith.addf %229, %230 : vector<8x128xf32>
    %232 = arith.negf %231 : vector<8x128xf32>
    %233 = math.exp %232 : vector<8x128xf32>
    %cst_60 = arith.constant 1.000000e+00 : f32
    %234 = vector.broadcast %cst_60 : f32 to vector<8x128xf32>
    %235 = arith.addf %234, %233 : vector<8x128xf32>
    %236 = arith.divf %234, %235 : vector<8x128xf32>
    %237 = vector.extract_strided_slice %236 {offsets = [0, 0], sizes = [8, 32], strides = [1, 1]} : vector<8x128xf32> to vector<8x32xf32>
    %238 = vector.extract_strided_slice %236 {offsets = [0, 32], sizes = [8, 32], strides = [1, 1]} : vector<8x128xf32> to vector<8x32xf32>
    %239 = vector.extract_strided_slice %236 {offsets = [0, 64], sizes = [8, 32], strides = [1, 1]} : vector<8x128xf32> to vector<8x32xf32>
    %cst_61 = arith.constant 2.000000e+00 : f32
    %240 = vector.broadcast %cst_61 : f32 to vector<8x32xf32>
    %241 = arith.mulf %240, %239 : vector<8x32xf32>
    %cst_62 = arith.constant 1.000000e+00 : f32
    %242 = vector.broadcast %cst_62 : f32 to vector<8x32xf32>
    %243 = arith.subf %241, %242 : vector<8x32xf32>
    %244 = vector.extract_strided_slice %236 {offsets = [0, 96], sizes = [8, 32], strides = [1, 1]} : vector<8x128xf32> to vector<8x32xf32>
    %245 = arith.mulf %238, %204 : vector<8x32xf32>
    %246 = arith.mulf %237, %243 : vector<8x32xf32>
    %247 = arith.addf %245, %246 : vector<8x32xf32>
    %248 = math.tanh %247 : vector<8x32xf32>
    %249 = arith.mulf %244, %248 : vector<8x32xf32>
    %cst_63 = arith.constant dense<0.000000e+00> : vector<8x128xf32>
    %250 = tpu.matmul %249, %1, %cst_63 {dimension_numbers = #tpu.dot_dimension_numbers<[1], [0], [0], [1], [0, 0, 1, 1], [], []>} : vector<8x32xf32>, vector<32x128xf32>, vector<8x128xf32> -> vector<8x128xf32>
    %cst_64 = arith.constant dense<0.000000e+00> : vector<8x128xf32>
    %251 = tpu.matmul %228, %2, %cst_64 {dimension_numbers = #tpu.dot_dimension_numbers<[1], [0], [0], [1], [0, 0, 1, 1], [], []>} : vector<8x32xf32>, vector<32x128xf32>, vector<8x128xf32> -> vector<8x128xf32>
    %252 = arith.addf %250, %251 : vector<8x128xf32>
    %253 = arith.addf %252, %12 : vector<8x128xf32>
    %254 = arith.negf %253 : vector<8x128xf32>
    %255 = math.exp %254 : vector<8x128xf32>
    %cst_65 = arith.constant 1.000000e+00 : f32
    %256 = vector.broadcast %cst_65 : f32 to vector<8x128xf32>
    %257 = arith.addf %256, %255 : vector<8x128xf32>
    %258 = arith.divf %256, %257 : vector<8x128xf32>
    %259 = vector.extract_strided_slice %258 {offsets = [0, 0], sizes = [8, 32], strides = [1, 1]} : vector<8x128xf32> to vector<8x32xf32>
    %260 = vector.extract_strided_slice %258 {offsets = [0, 32], sizes = [8, 32], strides = [1, 1]} : vector<8x128xf32> to vector<8x32xf32>
    %261 = vector.extract_strided_slice %258 {offsets = [0, 64], sizes = [8, 32], strides = [1, 1]} : vector<8x128xf32> to vector<8x32xf32>
    %cst_66 = arith.constant 2.000000e+00 : f32
    %262 = vector.broadcast %cst_66 : f32 to vector<8x32xf32>
    %263 = arith.mulf %262, %261 : vector<8x32xf32>
    %cst_67 = arith.constant 1.000000e+00 : f32
    %264 = vector.broadcast %cst_67 : f32 to vector<8x32xf32>
    %265 = arith.subf %263, %264 : vector<8x32xf32>
    %266 = vector.extract_strided_slice %258 {offsets = [0, 96], sizes = [8, 32], strides = [1, 1]} : vector<8x128xf32> to vector<8x32xf32>
    %267 = arith.mulf %260, %226 : vector<8x32xf32>
    %268 = arith.mulf %259, %265 : vector<8x32xf32>
    %269 = arith.addf %267, %268 : vector<8x32xf32>
    %270 = math.tanh %269 : vector<8x32xf32>
    %271 = arith.mulf %266, %270 : vector<8x32xf32>
    %272 = vector.extract_strided_slice %9 {offsets = [48, 0], sizes = [8, 128], strides = [1, 1]} : vector<64x128xf32> to vector<8x128xf32>
    %cst_68 = arith.constant dense<0.000000e+00> : vector<8x128xf32>
    %273 = tpu.matmul %249, %0, %cst_68 {dimension_numbers = #tpu.dot_dimension_numbers<[1], [0], [0], [1], [0, 0, 1, 1], [], []>} : vector<8x32xf32>, vector<32x128xf32>, vector<8x128xf32> -> vector<8x128xf32>
    %274 = arith.addf %272, %273 : vector<8x128xf32>
    %275 = arith.negf %274 : vector<8x128xf32>
    %276 = math.exp %275 : vector<8x128xf32>
    %cst_69 = arith.constant 1.000000e+00 : f32
    %277 = vector.broadcast %cst_69 : f32 to vector<8x128xf32>
    %278 = arith.addf %277, %276 : vector<8x128xf32>
    %279 = arith.divf %277, %278 : vector<8x128xf32>
    %280 = vector.extract_strided_slice %279 {offsets = [0, 0], sizes = [8, 32], strides = [1, 1]} : vector<8x128xf32> to vector<8x32xf32>
    %281 = vector.extract_strided_slice %279 {offsets = [0, 32], sizes = [8, 32], strides = [1, 1]} : vector<8x128xf32> to vector<8x32xf32>
    %282 = vector.extract_strided_slice %279 {offsets = [0, 64], sizes = [8, 32], strides = [1, 1]} : vector<8x128xf32> to vector<8x32xf32>
    %cst_70 = arith.constant 2.000000e+00 : f32
    %283 = vector.broadcast %cst_70 : f32 to vector<8x32xf32>
    %284 = arith.mulf %283, %282 : vector<8x32xf32>
    %cst_71 = arith.constant 1.000000e+00 : f32
    %285 = vector.broadcast %cst_71 : f32 to vector<8x32xf32>
    %286 = arith.subf %284, %285 : vector<8x32xf32>
    %287 = vector.extract_strided_slice %279 {offsets = [0, 96], sizes = [8, 32], strides = [1, 1]} : vector<8x128xf32> to vector<8x32xf32>
    %288 = arith.mulf %281, %247 : vector<8x32xf32>
    %289 = arith.mulf %280, %286 : vector<8x32xf32>
    %290 = arith.addf %288, %289 : vector<8x32xf32>
    %291 = math.tanh %290 : vector<8x32xf32>
    %292 = arith.mulf %287, %291 : vector<8x32xf32>
    %cst_72 = arith.constant dense<0.000000e+00> : vector<8x128xf32>
    %293 = tpu.matmul %292, %1, %cst_72 {dimension_numbers = #tpu.dot_dimension_numbers<[1], [0], [0], [1], [0, 0, 1, 1], [], []>} : vector<8x32xf32>, vector<32x128xf32>, vector<8x128xf32> -> vector<8x128xf32>
    %cst_73 = arith.constant dense<0.000000e+00> : vector<8x128xf32>
    %294 = tpu.matmul %271, %2, %cst_73 {dimension_numbers = #tpu.dot_dimension_numbers<[1], [0], [0], [1], [0, 0, 1, 1], [], []>} : vector<8x32xf32>, vector<32x128xf32>, vector<8x128xf32> -> vector<8x128xf32>
    %295 = arith.addf %293, %294 : vector<8x128xf32>
    %296 = arith.addf %295, %12 : vector<8x128xf32>
    %297 = arith.negf %296 : vector<8x128xf32>
    %298 = math.exp %297 : vector<8x128xf32>
    %cst_74 = arith.constant 1.000000e+00 : f32
    %299 = vector.broadcast %cst_74 : f32 to vector<8x128xf32>
    %300 = arith.addf %299, %298 : vector<8x128xf32>
    %301 = arith.divf %299, %300 : vector<8x128xf32>
    %302 = vector.extract_strided_slice %301 {offsets = [0, 0], sizes = [8, 32], strides = [1, 1]} : vector<8x128xf32> to vector<8x32xf32>
    %303 = vector.extract_strided_slice %301 {offsets = [0, 32], sizes = [8, 32], strides = [1, 1]} : vector<8x128xf32> to vector<8x32xf32>
    %304 = vector.extract_strided_slice %301 {offsets = [0, 64], sizes = [8, 32], strides = [1, 1]} : vector<8x128xf32> to vector<8x32xf32>
    %cst_75 = arith.constant 2.000000e+00 : f32
    %305 = vector.broadcast %cst_75 : f32 to vector<8x32xf32>
    %306 = arith.mulf %305, %304 : vector<8x32xf32>
    %cst_76 = arith.constant 1.000000e+00 : f32
    %307 = vector.broadcast %cst_76 : f32 to vector<8x32xf32>
    %308 = arith.subf %306, %307 : vector<8x32xf32>
    %309 = vector.extract_strided_slice %301 {offsets = [0, 96], sizes = [8, 32], strides = [1, 1]} : vector<8x128xf32> to vector<8x32xf32>
    %310 = arith.mulf %303, %269 : vector<8x32xf32>
    %311 = arith.mulf %302, %308 : vector<8x32xf32>
    %312 = arith.addf %310, %311 : vector<8x32xf32>
    %313 = math.tanh %312 : vector<8x32xf32>
    %314 = arith.mulf %309, %313 : vector<8x32xf32>
    %315 = vector.extract_strided_slice %9 {offsets = [56, 0], sizes = [8, 128], strides = [1, 1]} : vector<64x128xf32> to vector<8x128xf32>
    %cst_77 = arith.constant dense<0.000000e+00> : vector<8x128xf32>
    %316 = tpu.matmul %292, %0, %cst_77 {dimension_numbers = #tpu.dot_dimension_numbers<[1], [0], [0], [1], [0, 0, 1, 1], [], []>} : vector<8x32xf32>, vector<32x128xf32>, vector<8x128xf32> -> vector<8x128xf32>
    %317 = arith.addf %315, %316 : vector<8x128xf32>
    %318 = arith.negf %317 : vector<8x128xf32>
    %319 = math.exp %318 : vector<8x128xf32>
    %cst_78 = arith.constant 1.000000e+00 : f32
    %320 = vector.broadcast %cst_78 : f32 to vector<8x128xf32>
    %321 = arith.addf %320, %319 : vector<8x128xf32>
    %322 = arith.divf %320, %321 : vector<8x128xf32>
    %323 = vector.extract_strided_slice %322 {offsets = [0, 0], sizes = [8, 32], strides = [1, 1]} : vector<8x128xf32> to vector<8x32xf32>
    %324 = vector.extract_strided_slice %322 {offsets = [0, 32], sizes = [8, 32], strides = [1, 1]} : vector<8x128xf32> to vector<8x32xf32>
    %325 = vector.extract_strided_slice %322 {offsets = [0, 64], sizes = [8, 32], strides = [1, 1]} : vector<8x128xf32> to vector<8x32xf32>
    %cst_79 = arith.constant 2.000000e+00 : f32
    %326 = vector.broadcast %cst_79 : f32 to vector<8x32xf32>
    %327 = arith.mulf %326, %325 : vector<8x32xf32>
    %cst_80 = arith.constant 1.000000e+00 : f32
    %328 = vector.broadcast %cst_80 : f32 to vector<8x32xf32>
    %329 = arith.subf %327, %328 : vector<8x32xf32>
    %330 = vector.extract_strided_slice %322 {offsets = [0, 96], sizes = [8, 32], strides = [1, 1]} : vector<8x128xf32> to vector<8x32xf32>
    %331 = arith.mulf %324, %290 : vector<8x32xf32>
    %332 = arith.mulf %323, %329 : vector<8x32xf32>
    %333 = arith.addf %331, %332 : vector<8x32xf32>
    %334 = math.tanh %333 : vector<8x32xf32>
    %335 = arith.mulf %330, %334 : vector<8x32xf32>
    %cst_81 = arith.constant dense<0.000000e+00> : vector<8x128xf32>
    %336 = tpu.matmul %335, %1, %cst_81 {dimension_numbers = #tpu.dot_dimension_numbers<[1], [0], [0], [1], [0, 0, 1, 1], [], []>} : vector<8x32xf32>, vector<32x128xf32>, vector<8x128xf32> -> vector<8x128xf32>
    %cst_82 = arith.constant dense<0.000000e+00> : vector<8x128xf32>
    %337 = tpu.matmul %314, %2, %cst_82 {dimension_numbers = #tpu.dot_dimension_numbers<[1], [0], [0], [1], [0, 0, 1, 1], [], []>} : vector<8x32xf32>, vector<32x128xf32>, vector<8x128xf32> -> vector<8x128xf32>
    %338 = arith.addf %336, %337 : vector<8x128xf32>
    %339 = arith.addf %338, %12 : vector<8x128xf32>
    %340 = arith.negf %339 : vector<8x128xf32>
    %341 = math.exp %340 : vector<8x128xf32>
    %cst_83 = arith.constant 1.000000e+00 : f32
    %342 = vector.broadcast %cst_83 : f32 to vector<8x128xf32>
    %343 = arith.addf %342, %341 : vector<8x128xf32>
    %344 = arith.divf %342, %343 : vector<8x128xf32>
    %345 = vector.extract_strided_slice %344 {offsets = [0, 0], sizes = [8, 32], strides = [1, 1]} : vector<8x128xf32> to vector<8x32xf32>
    %346 = vector.extract_strided_slice %344 {offsets = [0, 32], sizes = [8, 32], strides = [1, 1]} : vector<8x128xf32> to vector<8x32xf32>
    %347 = vector.extract_strided_slice %344 {offsets = [0, 64], sizes = [8, 32], strides = [1, 1]} : vector<8x128xf32> to vector<8x32xf32>
    %cst_84 = arith.constant 2.000000e+00 : f32
    %348 = vector.broadcast %cst_84 : f32 to vector<8x32xf32>
    %349 = arith.mulf %348, %347 : vector<8x32xf32>
    %cst_85 = arith.constant 1.000000e+00 : f32
    %350 = vector.broadcast %cst_85 : f32 to vector<8x32xf32>
    %351 = arith.subf %349, %350 : vector<8x32xf32>
    %352 = vector.extract_strided_slice %344 {offsets = [0, 96], sizes = [8, 32], strides = [1, 1]} : vector<8x128xf32> to vector<8x32xf32>
    %353 = arith.mulf %346, %312 : vector<8x32xf32>
    %354 = arith.mulf %345, %351 : vector<8x32xf32>
    %355 = arith.addf %353, %354 : vector<8x32xf32>
    %356 = math.tanh %355 : vector<8x32xf32>
    %357 = arith.mulf %352, %356 : vector<8x32xf32>
    %c0_86 = arith.constant 0 : index
    %c0_87 = arith.constant 0 : index
    %358 = vector.load %arg2[%c0_86, %c0_87] : memref<8x1xf32, #tpu.memory_space<vmem>>, vector<8x1xf32>
    %c0_88 = arith.constant 0 : index
    %c0_89 = arith.constant 0 : index
    %359 = vector.load %arg9[%c0_88, %c0_89] : memref<1x128xf32, #tpu.memory_space<vmem>>, vector<1x128xf32>
    %360 = vector.broadcast %358 : vector<8x1xf32> to vector<8x128xf32>
    %361 = vector.broadcast %359 : vector<1x128xf32> to vector<8x128xf32>
    %362 = arith.mulf %360, %361 : vector<8x128xf32>
    %c0_90 = arith.constant 0 : index
    %c0_91 = arith.constant 0 : index
    %363 = vector.load %arg1[%c0_90, %c0_91] : memref<8x32xf32, #tpu.memory_space<vmem>>, vector<8x32xf32>
    %c0_92 = arith.constant 0 : index
    %c0_93 = arith.constant 0 : index
    %364 = vector.load %arg10[%c0_92, %c0_93] : memref<32x128xf32, #tpu.memory_space<vmem>>, vector<32x128xf32>
    %cst_94 = arith.constant dense<0.000000e+00> : vector<8x128xf32>
    %365 = tpu.matmul %363, %364, %cst_94 {dimension_numbers = #tpu.dot_dimension_numbers<[1], [0], [0], [1], [0, 0, 1, 1], [], []>} : vector<8x32xf32>, vector<32x128xf32>, vector<8x128xf32> -> vector<8x128xf32>
    %366 = arith.addf %362, %365 : vector<8x128xf32>
    %c0_95 = arith.constant 0 : index
    %c0_96 = arith.constant 0 : index
    %367 = vector.load %arg11[%c0_95, %c0_96] : memref<32x128xf32, #tpu.memory_space<vmem>>, vector<32x128xf32>
    %cst_97 = arith.constant dense<0.000000e+00> : vector<8x128xf32>
    %368 = tpu.matmul %357, %367, %cst_97 {dimension_numbers = #tpu.dot_dimension_numbers<[1], [0], [0], [1], [0, 0, 1, 1], [], []>} : vector<8x32xf32>, vector<32x128xf32>, vector<8x128xf32> -> vector<8x128xf32>
    %369 = arith.addf %366, %368 : vector<8x128xf32>
    %c0_98 = arith.constant 0 : index
    %c0_99 = arith.constant 0 : index
    %370 = vector.load %arg12[%c0_98, %c0_99] : memref<1x128xf32, #tpu.memory_space<vmem>>, vector<1x128xf32>
    %371 = vector.broadcast %370 : vector<1x128xf32> to vector<8x128xf32>
    %372 = arith.addf %369, %371 : vector<8x128xf32>
    %cst_100 = arith.constant 0.000000e+00 : f32
    %373 = vector.broadcast %cst_100 : f32 to vector<8x128xf32>
    %374 = arith.maximumf %372, %373 : vector<8x128xf32>
    %c0_101 = arith.constant 0 : index
    %c0_102 = arith.constant 0 : index
    %375 = vector.load %arg13[%c0_101, %c0_102] : memref<128x128xf32, #tpu.memory_space<vmem>>, vector<128x128xf32>
    %cst_103 = arith.constant dense<0.000000e+00> : vector<8x128xf32>
    %376 = tpu.matmul %374, %375, %cst_103 {dimension_numbers = #tpu.dot_dimension_numbers<[1], [0], [0], [1], [0, 0, 1, 1], [], []>} : vector<8x128xf32>, vector<128x128xf32>, vector<8x128xf32> -> vector<8x128xf32>
    %c0_104 = arith.constant 0 : index
    %c0_105 = arith.constant 0 : index
    %377 = vector.load %arg14[%c0_104, %c0_105] : memref<1x128xf32, #tpu.memory_space<vmem>>, vector<1x128xf32>
    %378 = vector.broadcast %377 : vector<1x128xf32> to vector<8x128xf32>
    %379 = arith.addf %376, %378 : vector<8x128xf32>
    %cst_106 = arith.constant 0.000000e+00 : f32
    %380 = vector.broadcast %cst_106 : f32 to vector<8x128xf32>
    %381 = arith.maximumf %379, %380 : vector<8x128xf32>
    %c0_107 = arith.constant 0 : index
    %c0_108 = arith.constant 0 : index
    %382 = vector.load %arg15[%c0_107, %c0_108] : memref<128x8xf32, #tpu.memory_space<vmem>>, vector<128x8xf32>
    %cst_109 = arith.constant dense<0.000000e+00> : vector<8x8xf32>
    %383 = tpu.matmul %381, %382, %cst_109 {dimension_numbers = #tpu.dot_dimension_numbers<[1], [0], [0], [1], [0, 0, 1, 1], [], []>} : vector<8x128xf32>, vector<128x8xf32>, vector<8x8xf32> -> vector<8x8xf32>
    %c0_110 = arith.constant 0 : index
    %c0_111 = arith.constant 0 : index
    %384 = vector.load %arg16[%c0_110, %c0_111] : memref<1x8xf32, #tpu.memory_space<vmem>>, vector<1x8xf32>
    %385 = vector.broadcast %384 : vector<1x8xf32> to vector<8x8xf32>
    %386 = arith.addf %383, %385 : vector<8x8xf32>
    %c0_112 = arith.constant 0 : index
    %c0_113 = arith.constant 0 : index
    %387 = vector.load %arg17[%c0_112, %c0_113] : memref<8x8xf32, #tpu.memory_space<vmem>>, vector<8x8xf32>
    tpu.vector_store %arg17[%c0_112, %c0_113], %386 {strides = array<i32>} : memref<8x8xf32, #tpu.memory_space<vmem>>, vector<8x8xf32>,
    return
  }
}

</mosaic_0001>

<bundles_post_ra>
// kernel: tpu_custom_call.1
= control target key start
LH: loop header
LB: loop body
LE: loop exit
PB: predicated region body
PF: predicated region fallthrough
CT: control target
= control target key end

     0   :  { %s4585_s0 = inlined_call_operand.vmem [shape: f32[64,32], index: 0, kind: input, shape index: {}]   ;;  %s4586_s1 = inlined_call_operand.hbm [shape: f32[8,32], index: 1, kind: input, shape index: {}]   ;;  %s4587_s2 = inlined_call_operand.vmem [shape: f32[8,1], index: 2, kind: input, shape index: {}]   ;;  %s4588_s3 = inlined_call_operand.vmem [shape: f32[32,128], index: 3, kind: input, shape index: {}]   ;;  %s4589_s4 = inlined_call_operand.vmem [shape: f32[32,128], index: 4, kind: input, shape index: {}]   ;;  %s4590_s5 = inlined_call_operand.vmem [shape: f32[1,128], index: 5, kind: input, shape index: {}]   ;;  %s4591_s6 = inlined_call_operand.vmem [shape: f32[32,128], index: 6, kind: input, shape index: {}]   ;;  %s4592_s7 = inlined_call_operand.vmem [shape: f32[32,128], index: 7, kind: input, shape index: {}]   ;;  %s4593_s8 = inlined_call_operand.vmem [shape: f32[1,128], index: 8, kind: input, shape index: {}]   ;;  %s4594_s9 = inlined_call_operand.vmem [shape: f32[1,128], index: 9, kind: input, shape index: {}]   ;;  %s4595_s10 = inlined_call_operand.hbm [shape: f32[32,128], index: 10, kind: input, shape index: {}]   ;;  %s4596_s11 = inlined_call_operand.hbm [shape: f32[32,128], index: 11, kind: input, shape index: {}]   ;;  %s4597_s12 = inlined_call_operand.vmem [shape: f32[1,128], index: 12, kind: input, shape index: {}]   ;;  %s4598_s13 = inlined_call_operand.vmem [shape: f32[128,128], index: 13, kind: input, shape index: {}]   ;;  %s4599_s14 = inlined_call_operand.vmem [shape: f32[1,128], index: 14, kind: input, shape index: {}]   ;;  %s4600_s15 = inlined_call_operand.vmem [shape: f32[128,8], index: 15, kind: input, shape index: {}]   ;;  %s4601_s16 = inlined_call_operand.vmem [shape: f32[1,8], index: 16, kind: input, shape index: {}]   ;;  %s4602_s17 = inlined_call_operand.hbm [shape: f32[8,8], index: 17, kind: output, shape index: {}]  }
   0x1   :  { %4606 = sst [smem:[#allocation12_spill]] %s4585_s0 }
   0x2   :  { %4607 = sst [smem:[#allocation13_spill]] %s4586_s1 }
   0x3   :  { %4608 = sst [smem:[#allocation14_spill]] %s4601_s16 }
   0x4   :  { %4609 = sst [smem:[#allocation15_spill]] %s4602_s17 }
   0x5   :  { %22 = vsyncpa [#allocation3], 0 }
   0x6   :  { %23 = vsyncpa [#allocation6], 0 }
   0x7   :  { %24 = vsyncpa [#allocation4], 0  ;;  %s3863_s24 = smov [#allocation5]   ;;  %s3769_s28 = scalar_lea.hbm %s4595_s10, 512 }
   0x8   :  { %s58_s25 = sshll.u32 %s3863_s24, 4  ;;  %p3770_p0 = scmp.ne.s32.totalorder %s4595_s10, %s3769_s28  ;;  %s59_s25 = int_to_ptr.vmem [resolvable:$true] %s58_s25 }
   0x9   :  { %p3773_p1 = scmp.lt.u32.totalorder %s3769_s28, %s4595_s10 }
   0xb   :  { %p3775_p2 = pnand %p3773_p1, %p3770_p0 }
   0xd   :  { %3778 = shalt.err (!%p3775_p2)
}
   0xe   :  { %s3779_s19 = scalar_lea.vmem %s59_s25, 512  ;;  %p3784_p4 = scmp.lt.s32.totalorder %s59_s25, %s59_s25 }
   0xf   :  { %p3780_p3 = scmp.ne.s32.totalorder %s59_s25, %s3779_s19  ;;  %p3785_p5 = scmp.lt.s32.totalorder %s3779_s19, %s3779_s19 }
  0x11   :  { %p3786_p6 = por %p3785_p5, %p3784_p4 }
  0x13   :  { %p3787_p7 = pnand %p3786_p6, %p3780_p3 }
  0x15   :  { %3790 = shalt.err (!%p3787_p7)
}
  0x16   :  { %s3864_s1 = smov 128   ;;  %s3865_s20 = smov 8  }
  0x17   :  { %64 = dma.hbm_to_vmem [thread:$0]  %s4595_s10, 512, %s59_s25, [#allocation6], %s3864_s1, %s3864_s1, %s3865_s20  }
  0x18   :  { %s3866_s23 = smov [#allocation2]   ;;  %s3867_s26 = smov [#allocation7]  }
  0x19   :  { %s33_s24 = sshll.u32 %s3866_s23, 4  ;;  %s70_s27 = sshll.u32 %s3867_s26, 4  ;;  %s34_s24 = int_to_ptr.vmem [resolvable:$true] %s33_s24  ;;  %s71_s27 = int_to_ptr.vmem [resolvable:$true] %s70_s27 }
  0x1a   :  { %s4610_s0 = sld [smem:[#allocation13_spill]] }
  0x20   :  { %s3791_s30 = scalar_lea.hbm %s4610_s0, 128 }
  0x21   :  { %p3792_p8 = scmp.ne.s32.totalorder %s4610_s0, %s3791_s30  ;;  %p3795_p9 = scmp.lt.u32.totalorder %s3791_s30, %s4610_s0 }
  0x23   :  { %p3797_p10 = pnand %p3795_p9, %p3792_p8 }
  0x25   :  { %3800 = shalt.err (!%p3797_p10)
}
  0x26   :  { %s3801_s10 = scalar_lea.vmem %s34_s24, 128  ;;  %p3806_p12 = scmp.lt.s32.totalorder %s34_s24, %s34_s24 }
  0x27   :  { %p3802_p11 = scmp.ne.s32.totalorder %s34_s24, %s3801_s10  ;;  %p3807_p13 = scmp.lt.s32.totalorder %s3801_s10, %s3801_s10 }
  0x29   :  { %p3808_p0 = por %p3807_p13, %p3806_p12 }
  0x2b   :  { %p3809_p1 = pnand %p3808_p0, %p3802_p11 }
  0x2d   :  { %3812 = shalt.err (!%p3809_p1)
}
  0x2e   :  { %36 = dma.hbm_to_vmem [thread:$0]  %s4610_s0, 128, %s34_s24, [#allocation3]  }
  0x2f   :  { %s3813_s26 = scalar_lea.hbm %s4596_s11, 512 }
  0x30   :  { %p3814_p2 = scmp.ne.s32.totalorder %s4596_s11, %s3813_s26  ;;  %p3817_p3 = scmp.lt.u32.totalorder %s3813_s26, %s4596_s11 }
  0x32   :  { %p3819_p4 = pnand %p3817_p3, %p3814_p2 }
  0x34   :  { %3822 = shalt.err (!%p3819_p4)
}
  0x35   :  { %s3823_s30 = scalar_lea.vmem %s71_s27, 512  ;;  %p3828_p6 = scmp.lt.s32.totalorder %s71_s27, %s71_s27 }
  0x36   :  { %p3824_p5 = scmp.ne.s32.totalorder %s71_s27, %s3823_s30  ;;  %p3829_p7 = scmp.lt.s32.totalorder %s3823_s30, %s3823_s30 }
  0x38   :  { %p3830_p8 = por %p3829_p7, %p3828_p6 }
  0x3a   :  { %p3831_p9 = pnand %p3830_p8, %p3824_p5 }
  0x3c   :  { %3834 = shalt.err (!%p3831_p9)
}
  0x3d   :  { %76 = dma.hbm_to_vmem [thread:$0]  %s4596_s11, 512, %s71_s27, [#allocation6], %s3864_s1, %s3864_s1, %s3865_s20  }
  0x3e   :  { %3857 = dma.done.wait [#allocation3], 128  }
  0x3f   :  { %3858 = vsyncadd [#allocation3], 4294967168 }
  0x40   :  { %3859 = dma.done.wait [#allocation6], 1024  }
  0x41   :  { %3860 = vsyncadd [#allocation6], 4294966272  ;;  %v3868_v0 = vmov 0.0|0.0   ;;  %vm3869_vm0 = vmmov 0   ;;  %v3870_v1 = vmov 0.0   ;;  %v116_v2 = vld [vmem:[%s4588_s3] sm:$0xff] }
  0x42   :  { %3455 = vmatprep.subr.bf16.mxu1 %v3868_v0  ;;  %3099 = vmatprep.mubr.msk.f32.mxu1 %vm3869_vm0, %v3870_v1  ;;  %v117_v3 = vld [vmem:[%s4588_s3 + $0x8] sm:$0xff]  ;;  %v96_v4 = vld [vmem:[%s4589_s4] sm:$0xff]  ;;  %vm127_vm1 = vcmask 261120   ;;  %v118_v7 = vld [vmem:[%s4588_s3 + $0x10] sm:$0xff]  ;;  %s4611_s28 = sld [smem:[#allocation12_spill]]  ;;  %s3871_s10 = smov 64  }
  0x43   :  { %v3447_v5 = vpack.c.bf16 %v117_v3, %v116_v2  ;;  %v97_v6 = vld [vmem:[%s4589_s4 + $0x8] sm:$0xff]  ;;  %v119_v8 = vld [vmem:[%s4588_s3 + $0x18] sm:$0xff]  ;;  %v98_v12 = vld [vmem:[%s4589_s4 + $0x10] sm:$0xff]  ;;  %s3872_s25 = smov 32   ;;  %s3874_s23 = smov [#allocation8]   ;;  %vm2807_vm2 = vcmask 64512  }
  0x44   :  { %v4028_v9 = vpack.c.bf16 %v97_v6, %v96_v4  ;;  %v3451_v10 = vpack.c.bf16 %v119_v8, %v118_v7  ;;  %v99_v13 = vld [vmem:[%s4589_s4 + $0x18] sm:$0xff]  ;;  %v4057_v16 = vld [vmem:[%s4590_s5] ss:$0 sm:$0xff]  ;;  %v101_v35 = vld [vmem:[%s4591_s6 + $0x8] sm:$0xff]  ;;  %s2815_s26 = sshll.u32 %s3874_s23, 4  ;;  %s2816_s26 = int_to_ptr.vmem [resolvable:$true] %s2815_s26 }
  0x45   :  { %3448 = vmatprep.subr.bf16.mxu0 %v3447_v5  ;;  %v4041_v14 = vpack.c.bf16 %v99_v13, %v98_v12  ;;  %v100_v34 = vld [vmem:[%s4591_s6] sm:$0xff]  ;;  %v105_v38 = vld [vmem:[%s4592_s7 + $0x8] sm:$0xff]  ;;  %v106_v42 = vld [vmem:[%s4592_s7 + $0x10] sm:$0xff]  ;;  %p3840_p11 = scmp.lt.s32.totalorder %s2816_s26, %s2816_s26 }
  0x46   :  { %3450 = vmatpush3.bf16.msra.mxu0 %v3447_v5  ;;  %3457 = vmatpush3.bf16.msra.mxu1 %v4028_v9  ;;  %v104_v36 = vld [vmem:[%s4592_s7] sm:$0xff]  ;;  %v4076_v37 = vpack.c.bf16 %v101_v35, %v100_v34  ;;  %v107_v43 = vld [vmem:[%s4592_s7 + $0x18] sm:$0xff]  ;;  %v102_v45 = vld [vmem:[%s4591_s6 + $0x10] sm:$0xff] }
  0x47   :  { %3452 = vmatprep.subr.bf16.mxu0 %v3451_v10  ;;  %3458 = vmatprep.subr.bf16.mxu1 %v3868_v0  ;;  %v4087_v41 = vpack.c.bf16 %v105_v38, %v104_v36  ;;  %v103_v46 = vld [vmem:[%s4591_s6 + $0x18] sm:$0xff]  ;;  %v4108_v47 = vpack.c.bf16 %v107_v43, %v106_v42  ;;  %v4173_v3 = vld [vmem:[%s4593_s8] ss:$0 sm:$0xff]  ;;  %s4612_s6 = sld [smem:[#allocation14_spill]] }
  0x48   :  { %v108_v11 = vld [vmem:[%s4611_s28] sm:$0xff]  ;;  %v109_v15 = vld [vmem:[%s4611_s28 + $0x8] sm:$0xff]  ;;  %v110_v39 = vld [vmem:[%s4611_s28 + $0x10] sm:$0xff]  ;;  %v4110_v48 = vpack.c.bf16 %v103_v46, %v102_v45 }
  0x49   :  { %3079 = vmatprep.mubr.msk.f32.mxu0 %vm127_vm1, %v108_v11  ;;  %v111_v40 = vld [vmem:[%s4611_s28 + $0x18] sm:$0xff]  ;;  %v112_v44 = vld [vmem:[%s4611_s28 + $0x20] sm:$0xff]  ;;  %v113_v49 = vld [vmem:[%s4611_s28 + $0x28] sm:$0xff] }
  0x4a   :  { %3454 = vmatpush3.bf16.msra.mxu0 %v3451_v10  ;;  %3460 = vmatpush3.bf16.msra.mxu1 %v4041_v14  ;;  %v114_v50 = vld [vmem:[%s4611_s28 + $0x30] sm:$0xff]  ;;  %v115_v51 = vld [vmem:[%s4611_s28 + $0x38] sm:$0xff] }
  0x4b   :  { %3467 = vmatprep.subr.bf16.mxu0 %v3868_v0  ;;  %3461 = vmatprep.subr.bf16.mxu1 %v3868_v0 }
  0x4d   :  { %3080 = vmatmul.mubr.msk.f32.vlgmr.msra.gmra.mrb[0].mxu0 %vm127_vm1, %v109_v15  ;;  %3100 = vmatmul.mubr.f32.vlgmr.msra.gmra.mrb[0].mxu1 %v3870_v1 }
  0x4e   :  { %3110 = vmatprep.mubr.msk.f32.mxu1 %vm3869_vm0, %v3870_v1  ;;  %3082 = vmatprep.mubr.msk.f32.mxu0 %vm127_vm1, %v110_v39 }
  0x4f   :  { %3469 = vmatpush3.bf16.msra.mxu0 %v4076_v37  ;;  %3463 = vmatpush3.bf16.msra.mxu1 %v4087_v41 }
  0x50   :  { %3464 = vmatprep.subr.bf16.mxu1 %v3868_v0  ;;  %3470 = vmatprep.subr.bf16.mxu0 %v3868_v0 }
  0x51   :  { %3083 = vmatmul.mubr.msk.f32.gmra.mrb[2].mxu0 %vm127_vm1, %v111_v40 }
  0x52   :  { %3085 = vmatprep.mubr.msk.f32.mxu0 %vm127_vm1, %v112_v44 }
  0x53   :  { %3472 = vmatpush3.bf16.msra.mxu0 %v4110_v48  ;;  %3466 = vmatpush3.bf16.msra.mxu1 %v4108_v47 }
  0x54   :  { %3473 = vmatprep.subr.bf16.mxu1 %v3868_v0  ;;  %3479 = vmatprep.subr.bf16.mxu0 %v3868_v0 }
  0x55   :  { %3086 = vmatmul.mubr.msk.f32.gmra.mrb[4].mxu0 %vm127_vm1, %v113_v49 }
  0x56   :  { %3088 = vmatprep.mubr.msk.f32.mxu0 %vm127_vm1, %v114_v50  ;;  %3111 = vmatmul.mubr.f32.vlgmr.msra.gmra.mrb[2].mxu1 %v3870_v1 }
  0x57   :  { %3475 = vmatpush3.bf16.msra.mxu1 %v4028_v9  ;;  %3132 = vmatprep.mubr.msk.f32.mxu1 %vm3869_vm0, %v3870_v1 }
  0x58   :  { %3476 = vmatprep.subr.bf16.mxu1 %v3868_v0 }
  0x59   :  { %3089 = vmatmul.mubr.msk.f32.gmra.mrb[6].mxu0 %vm127_vm1, %v115_v51 }
  0x5a   :  { %3121 = vmatprep.mubr.msk.f32.mxu0 %vm3869_vm0, %v3870_v1 }
  0x5b   :  { %3478 = vmatpush3.bf16.msra.mxu1 %v4041_v14 }
  0x5c   :  { %3485 = vmatprep.subr.bf16.mxu1 %v3868_v0 }
 0x120   :  { %v4059_v17 = vpop.f32.mrb[0].mxu0  ;;  %v333_v18 = vpop.f32.mrb[0].mxu1 }
 0x121   :  { %v218_v19 = vpop.f32.mrb[1].mxu0  ;;  %v3101_v20 = vpop.f32.mrb[1].mxu1  ;;  %v224_v2 = vadd.f32 %v4059_v17, %v4057_v16 }
 0x122   :  { %v219_v21 = vadd.f32 %v4057_v16, %v218_v19 }
 0x124   :  { %v337_v22 = vadd.f32 %v333_v18, %v219_v21  ;;  %v4142_v55 = vpop.f32.mrb[2].mxu0 }
 0x125   :  { %v4144_v56 = vpop.f32.mrb[3].mxu0 }
 0x126   :  { %v2835_v23 = vmul.f32 -1.442695, %v337_v22 }
 0x128   :  { %3672 = vpow2.f32 %v2835_v23  ;;  %v4146_v57 = vpop.f32.mrb[4].mxu0 }
 0x129   :  { %v4148_v58 = vpop.f32.mrb[5].mxu0  ;;  %v429_v59 = vpop.f32.mrb[2].mxu1 }
 0x12a   :  { %v3112_v61 = vpop.f32.mrb[3].mxu1 }
 0x12c   :  { %v4150_v60 = vpop.f32.mrb[6].mxu0 }
 0x12d   :  { %v4152_v62 = vpop.f32.mrb[7].mxu0 }
 0x132   :  { %v3673_v24 = vpop.eup %3672 }
 0x133   :  { %v341_v25 = vadd.f32 1.0, %v3673_v24 }
 0x135   :  { %3674 = vrcp.f32 %v341_v25 }
 0x13f   :  { %v3675_v26 = vpop.eup %3674 }
 0x140   :  { %v344_v27 = vmul.f32 2.0, %v3675_v26  ;;  %v346_v31 = vmul.f32 0.0, %v3675_v26 }
 0x142   :  { %v2836_v28 = vadd.f32 -1.0, %v344_v27 }
 0x144   :  { %348 = vrot.lane.b32.xlu0 %v2836_v28, %s3871_s10 }
 0x1b6   :  { %v349_v29 = vpop.permute.xlu0 %348 }
 0x1b7   :  { %v351_v30 = vmul.f32 %v3675_v26, %v349_v29 }
 0x1b9   :  { %353 = vrot.lane.b32.xlu0 %v351_v30, %s3872_s25 }
 0x22b   :  { %v354_v32 = vpop.permute.xlu0 %353 }
 0x22c   :  { %v4064_v33 = vadd.f32 %v354_v32, %v346_v31 }
 0x22e   :  { %3676 = vtanh.f32 %v4064_v33 }
 0x238   :  { %v3677_v52 = vpop.eup %3676 }
 0x239   :  { %359 = vrot.lane.b32.xlu1 %v3677_v52, %s3871_s10 }
 0x2ab   :  { %v360_v53 = vpop.permute.xlu1 %359 }
 0x2ac   :  { %v362_v54 = vmul.f32 %v3675_v26, %v360_v53 }
 0x2ae   :  { %434 = vrot.lane.b32.xlu1 %v362_v54, %s3872_s25 }
 0x320   :  { %v435_v63 = vpop.permute.xlu1 %434 }
 0x321   :  { %3122 = vmatmul.mubr.msk.f32.vlgmr.msra.gmra.mrb[8].mxu0 %vm127_vm1, %v435_v63  ;;  %3133 = vmatmul.mubr.msk.f32.vlgmr.msra.gmra.mrb[4].mxu1 %vm127_vm1, %v435_v63 }
 0x322   :  { %3487 = vmatpush3.bf16.msra.mxu1 %v4076_v37  ;;  %3481 = vmatpush3.bf16.msra.mxu0 %v4087_v41 }
 0x323   :  { %3488 = vmatprep.subr.bf16.mxu1 %v3868_v0  ;;  %3482 = vmatprep.subr.bf16.mxu0 %v3868_v0 }
 0x324   :  { %3154 = vmatprep.mubr.msk.f32.mxu1 %vm3869_vm0, %v3870_v1  ;;  %3143 = vmatprep.mubr.msk.f32.mxu0 %vm3869_vm0, %v3870_v1 }
 0x326   :  { %3490 = vmatpush3.bf16.msra.mxu1 %v4110_v48  ;;  %3484 = vmatpush3.bf16.msra.mxu0 %v4108_v47 }
 0x327   :  { %3491 = vmatprep.subr.bf16.mxu0 %v3868_v0  ;;  %3497 = vmatprep.subr.bf16.mxu1 %v3868_v0 }
 0x3f4   :  { %v504_v4 = vpop.f32.mrb[8].mxu0  ;;  %v600_v5 = vpop.f32.mrb[4].mxu1 }
 0x3f5   :  { %v505_v6 = vadd.f32 %v504_v4, %v429_v59  ;;  %v604_v7 = vadd.f32 %v600_v5, %v224_v2  ;;  %v3123_v8 = vpop.f32.mrb[9].mxu0  ;;  %v3134_v10 = vpop.f32.mrb[5].mxu1  ;;  %v229_v59 = vadd.f32 %v4057_v16, %v4144_v56 }
 0x3f7   :  { %v508_v11 = vadd.f32 %v4173_v3, %v505_v6  ;;  %v2841_v12 = vmul.f32 -1.442695, %v604_v7 }
 0x3f9   :  { %v2838_v13 = vmul.f32 -1.442695, %v508_v11  ;;  %3678 = vpow2.f32 %v2841_v12 }
 0x3fb   :  { %3680 = vpow2.f32 %v2838_v13 }
 0x403   :  { %v3679_v15 = vpop.eup %3678 }
 0x404   :  { %v608_v18 = vadd.f32 1.0, %v3679_v15 }
 0x405   :  { %v3681_v17 = vpop.eup %3680 }
 0x406   :  { %v512_v19 = vadd.f32 1.0, %v3681_v17  ;;  %3682 = vrcp.f32 %v608_v18 }
 0x408   :  { %3684 = vrcp.f32 %v512_v19 }
 0x410   :  { %v3683_v20 = vpop.eup %3682 }
 0x411   :  { %v611_v21 = vmul.f32 2.0, %v3683_v20  ;;  %v613_v30 = vmul.f32 %v3683_v20, %v4064_v33 }
 0x412   :  { %v3685_v22 = vpop.eup %3684 }
 0x413   :  { %v2842_v23 = vadd.f32 -1.0, %v611_v21  ;;  %v515_v24 = vmul.f32 2.0, %v3685_v22  ;;  %v517_v34 = vmul.f32 0.0, %v3685_v22 }
 0x415   :  { %615 = vrot.lane.b32.xlu1 %v2842_v23, %s3871_s10  ;;  %v2839_v25 = vadd.f32 -1.0, %v515_v24 }
 0x417   :  { %519 = vrot.lane.b32.xlu0 %v2839_v25, %s3871_s10 }
 0x487   :  { %v616_v26 = vpop.permute.xlu1 %615 }
 0x488   :  { %v618_v27 = vmul.f32 %v3683_v20, %v616_v26 }
 0x489   :  { %v520_v28 = vpop.permute.xlu0 %519 }
 0x48a   :  { %v522_v29 = vmul.f32 %v3685_v22, %v520_v28  ;;  %620 = vrot.lane.b32.xlu1 %v618_v27, %s3872_s25 }
 0x48c   :  { %524 = vrot.lane.b32.xlu0 %v522_v29, %s3872_s25 }
 0x4fc   :  { %v621_v31 = vpop.permute.xlu1 %620 }
 0x4fd   :  { %v4181_v32 = vadd.f32 %v621_v31, %v613_v30 }
 0x4fe   :  { %v525_v35 = vpop.permute.xlu0 %524 }
 0x4ff   :  { %3686 = vtanh.f32 %v4181_v32  ;;  %v4184_v36 = vadd.f32 %v525_v35, %v517_v34 }
 0x501   :  { %3688 = vtanh.f32 %v4184_v36 }
 0x509   :  { %v3687_v38 = vpop.eup %3686 }
 0x50a   :  { %626 = vrot.lane.b32.xlu1 %v3687_v38, %s3871_s10 }
 0x50b   :  { %v3689_v39 = vpop.eup %3688 }
 0x50c   :  { %530 = vrot.lane.b32.xlu0 %v3689_v39, %s3871_s10 }
 0x57c   :  { %v627_v40 = vpop.permute.xlu1 %626 }
 0x57d   :  { %v629_v42 = vmul.f32 %v3683_v20, %v627_v40  ;;  %v234_v40 = vadd.f32 %v4142_v55, %v4057_v16 }
 0x57e   :  { %v531_v33 = vpop.permute.xlu0 %530 }
 0x57f   :  { %v533_v43 = vmul.f32 %v3685_v22, %v531_v33  ;;  %706 = vrot.lane.b32.xlu1 %v629_v42, %s3872_s25 }
 0x581   :  { %631 = vrot.lane.b32.xlu0 %v533_v43, %s3872_s25 }
 0x5f1   :  { %v707_v44 = vpop.permute.xlu1 %706 }
 0x5f2   :  { %3155 = vmatmul.mubr.msk.f32.vlgmr.msra.gmra.mrb[6].mxu1 %vm127_vm1, %v707_v44 }
 0x5f3   :  { %v632_v45 = vpop.permute.xlu0 %631  ;;  %3499 = vmatpush3.bf16.msra.mxu1 %v4087_v41  ;;  %3176 = vmatprep.mubr.msk.f32.mxu1 %vm3869_vm0, %v3870_v1 }
 0x5f4   :  { %3144 = vmatmul.mubr.msk.f32.vlgmr.msra.gmra.mrb[10].mxu0 %vm127_vm1, %v632_v45  ;;  %3500 = vmatprep.subr.bf16.mxu1 %v3868_v0 }
 0x5f5   :  { %3493 = vmatpush3.bf16.msra.mxu0 %v4028_v9  ;;  %3165 = vmatprep.mubr.msk.f32.mxu0 %vm3869_vm0, %v3870_v1 }
 0x5f6   :  { %3494 = vmatprep.subr.bf16.mxu0 %v3868_v0 }
 0x5f7   :  { %3502 = vmatpush3.bf16.msra.mxu1 %v4108_v47 }
 0x5f8   :  { %3509 = vmatprep.subr.bf16.mxu1 %v3868_v0 }
 0x5f9   :  { %3496 = vmatpush3.bf16.msra.mxu0 %v4041_v14 }
 0x5fa   :  { %3503 = vmatprep.subr.bf16.mxu0 %v3868_v0 }
 0x5fc   :  { %3166 = vmatmul.mubr.msk.f32.vlgmr.msra.gmra.mrb[12].mxu0 %vm127_vm1, %v707_v44 }
 0x5fd   :  { %3505 = vmatpush3.bf16.msra.mxu0 %v4076_v37  ;;  %3187 = vmatprep.mubr.msk.f32.mxu0 %vm3869_vm0, %v3870_v1 }
 0x5fe   :  { %3506 = vmatprep.subr.bf16.mxu0 %v3868_v0 }
 0x601   :  { %3508 = vmatpush3.bf16.msra.mxu0 %v4110_v48 }
 0x602   :  { %3515 = vmatprep.subr.bf16.mxu0 %v3868_v0 }
 0x6c5   :  { %v776_v46 = vpop.f32.mrb[6].mxu1 }
 0x6c6   :  { %v3156_v49 = vpop.f32.mrb[7].mxu1 }
 0x6c7   :  { %v701_v50 = vpop.f32.mrb[10].mxu0 }
 0x6c8   :  { %v777_v51 = vadd.f32 %v776_v46, %v701_v50  ;;  %v3145_v52 = vpop.f32.mrb[11].mxu0 }
 0x6ca   :  { %v780_v53 = vadd.f32 %v4173_v3, %v777_v51 }
 0x6cc   :  { %v2845_v54 = vmul.f32 -1.442695, %v780_v53 }
 0x6ce   :  { %3690 = vpow2.f32 %v2845_v54 }
 0x6cf   :  { %v872_v61 = vpop.f32.mrb[12].mxu0 }
 0x6d0   :  { %v876_v63 = vadd.f32 %v872_v61, %v229_v59  ;;  %v3167_v2 = vpop.f32.mrb[13].mxu0 }
 0x6d2   :  { %v2848_v4 = vmul.f32 -1.442695, %v876_v63 }
 0x6d4   :  { %3692 = vpow2.f32 %v2848_v4 }
 0x6d8   :  { %v3691_v5 = vpop.eup %3690 }
 0x6d9   :  { %v784_v6 = vadd.f32 1.0, %v3691_v5 }
 0x6db   :  { %3694 = vrcp.f32 %v784_v6 }
 0x6de   :  { %v3693_v7 = vpop.eup %3692 }
 0x6df   :  { %v880_v8 = vadd.f32 1.0, %v3693_v7 }
 0x6e1   :  { %3696 = vrcp.f32 %v880_v8 }
 0x6e5   :  { %v3695_v10 = vpop.eup %3694 }
 0x6e6   :  { %v787_v11 = vmul.f32 2.0, %v3695_v10  ;;  %v789_v21 = vmul.f32 %v3695_v10, %v4184_v36 }
 0x6e8   :  { %v2846_v12 = vadd.f32 -1.0, %v787_v11 }
 0x6ea   :  { %791 = vrot.lane.b32.xlu0 %v2846_v12, %s3871_s10 }
 0x6eb   :  { %v3697_v13 = vpop.eup %3696 }
 0x6ec   :  { %v883_v15 = vmul.f32 2.0, %v3697_v13  ;;  %v885_v24 = vmul.f32 %v3697_v13, %v4181_v32 }
 0x6ee   :  { %v2849_v56 = vadd.f32 -1.0, %v883_v15 }
 0x6f0   :  { %887 = vrot.lane.b32.xlu1 %v2849_v56, %s3871_s10 }
 0x75c   :  { %v792_v18 = vpop.permute.xlu0 %791 }
 0x75d   :  { %v794_v17 = vmul.f32 %v3695_v10, %v792_v18 }
 0x75f   :  { %796 = vrot.lane.b32.xlu0 %v794_v17, %s3872_s25 }
 0x762   :  { %v888_v19 = vpop.permute.xlu1 %887 }
 0x763   :  { %v890_v20 = vmul.f32 %v3697_v13, %v888_v19 }
 0x765   :  { %892 = vrot.lane.b32.xlu1 %v890_v20, %s3872_s25 }
 0x7d1   :  { %v797_v22 = vpop.permute.xlu0 %796 }
 0x7d2   :  { %v4220_v23 = vadd.f32 %v797_v22, %v789_v21 }
 0x7d4   :  { %3698 = vtanh.f32 %v4220_v23 }
 0x7d7   :  { %v893_v25 = vpop.permute.xlu1 %892 }
 0x7d8   :  { %v4224_v26 = vadd.f32 %v893_v25, %v885_v24 }
 0x7da   :  { %3700 = vtanh.f32 %v4224_v26 }
 0x7de   :  { %v3699_v27 = vpop.eup %3698 }
 0x7df   :  { %802 = vrot.lane.b32.xlu0 %v3699_v27, %s3871_s10 }
 0x7e4   :  { %v3701_v28 = vpop.eup %3700 }
 0x7e5   :  { %898 = vrot.lane.b32.xlu1 %v3701_v28, %s3871_s10 }
 0x851   :  { %v803_v29 = vpop.permute.xlu0 %802 }
 0x852   :  { %v805_v30 = vmul.f32 %v3695_v10, %v803_v29 }
 0x854   :  { %903 = vrot.lane.b32.xlu0 %v805_v30, %s3872_s25 }
 0x857   :  { %v899_v31 = vpop.permute.xlu1 %898 }
 0x858   :  { %v901_v34 = vmul.f32 %v3697_v13, %v899_v31 }
 0x85a   :  { %978 = vrot.lane.b32.xlu1 %v901_v34, %s3872_s25  ;;  %v239_v34 = vadd.f32 %v4057_v16, %v4148_v58 }
 0x8c6   :  { %v904_v32 = vpop.permute.xlu0 %903 }
 0x8c7   :  { %3177 = vmatmul.mubr.msk.f32.vlgmr.msra.gmra.mrb[8].mxu1 %vm127_vm1, %v904_v32 }
 0x8c8   :  { %3511 = vmatpush3.bf16.msra.mxu1 %v4028_v9  ;;  %3198 = vmatprep.mubr.msk.f32.mxu1 %vm3869_vm0, %v3870_v1 }
 0x8c9   :  { %3512 = vmatprep.subr.bf16.mxu1 %v3868_v0 }
 0x8cc   :  { %v979_v35 = vpop.permute.xlu1 %978  ;;  %3514 = vmatpush3.bf16.msra.mxu1 %v4041_v14 }
 0x8cd   :  { %3188 = vmatmul.mubr.msk.f32.vlgmr.msra.gmra.mrb[14].mxu0 %vm127_vm1, %v979_v35  ;;  %3521 = vmatprep.subr.bf16.mxu1 %v3868_v0 }
 0x8ce   :  { %3517 = vmatpush3.bf16.msra.mxu0 %v4087_v41  ;;  %3209 = vmatprep.mubr.msk.f32.mxu0 %vm3869_vm0, %v3870_v1 }
 0x8cf   :  { %3199 = vmatmul.mubr.msk.f32.vlgmr.msra.gmra.mrb[10].mxu1 %vm127_vm1, %v979_v35  ;;  %3518 = vmatprep.subr.bf16.mxu0 %v3868_v0 }
 0x8d0   :  { %3523 = vmatpush3.bf16.msra.mxu1 %v4076_v37  ;;  %3220 = vmatprep.mubr.msk.f32.mxu1 %vm3869_vm0, %v3870_v1 }
 0x8d1   :  { %3524 = vmatprep.subr.bf16.mxu1 %v3868_v0 }
 0x8d2   :  { %3520 = vmatpush3.bf16.msra.mxu0 %v4108_v47 }
 0x8d3   :  { %3527 = vmatprep.subr.bf16.mxu0 %v3868_v0 }
 0x8d4   :  { %3526 = vmatpush3.bf16.msra.mxu1 %v4110_v48 }
 0x8d5   :  { %3533 = vmatprep.subr.bf16.mxu1 %v3868_v0 }
 0x99a   :  { %v973_v36 = vpop.f32.mrb[8].mxu1 }
 0x99b   :  { %v3178_v38 = vpop.f32.mrb[9].mxu1 }
 0x9a0   :  { %v1048_v39 = vpop.f32.mrb[14].mxu0 }
 0x9a1   :  { %v1049_v42 = vadd.f32 %v1048_v39, %v973_v36  ;;  %v3189_v33 = vpop.f32.mrb[15].mxu0 }
 0x9a2   :  { %v1144_v43 = vpop.f32.mrb[10].mxu1 }
 0x9a3   :  { %v1052_v44 = vadd.f32 %v4173_v3, %v1049_v42  ;;  %v1148_v45 = vadd.f32 %v1144_v43, %v234_v40  ;;  %v3200_v46 = vpop.f32.mrb[11].mxu1 }
 0x9a5   :  { %v2852_v49 = vmul.f32 -1.442695, %v1052_v44  ;;  %v2855_v50 = vmul.f32 -1.442695, %v1148_v45 }
 0x9a7   :  { %3702 = vpow2.f32 %v2852_v49 }
 0x9a8   :  { %3704 = vpow2.f32 %v2855_v50 }
 0x9b1   :  { %v3703_v51 = vpop.eup %3702 }
 0x9b2   :  { %v3705_v52 = vpop.eup %3704  ;;  %v1056_v53 = vadd.f32 1.0, %v3703_v51 }
 0x9b3   :  { %v1152_v54 = vadd.f32 1.0, %v3705_v52 }
 0x9b4   :  { %3706 = vrcp.f32 %v1056_v53 }
 0x9b5   :  { %3708 = vrcp.f32 %v1152_v54 }
 0x9be   :  { %v3707_v59 = vpop.eup %3706 }
 0x9bf   :  { %v3709_v61 = vpop.eup %3708  ;;  %v1059_v55 = vmul.f32 2.0, %v3707_v59  ;;  %v1061_v10 = vmul.f32 %v3707_v59, %v4220_v23 }
 0x9c0   :  { %v1155_v63 = vmul.f32 2.0, %v3709_v61  ;;  %v1157_v12 = vmul.f32 %v3709_v61, %v4224_v26 }
 0x9c1   :  { %v2853_v2 = vadd.f32 -1.0, %v1059_v55 }
 0x9c2   :  { %v2856_v4 = vadd.f32 -1.0, %v1155_v63 }
 0x9c3   :  { %1063 = vrot.lane.b32.xlu0 %v2853_v2, %s3871_s10 }
 0x9c4   :  { %1159 = vrot.lane.b32.xlu1 %v2856_v4, %s3871_s10 }
 0xa35   :  { %v1064_v5 = vpop.permute.xlu0 %1063 }
 0xa36   :  { %v1066_v6 = vmul.f32 %v3707_v59, %v1064_v5  ;;  %v1160_v7 = vpop.permute.xlu1 %1159 }
 0xa37   :  { %v1162_v8 = vmul.f32 %v3709_v61, %v1160_v7 }
 0xa38   :  { %1068 = vrot.lane.b32.xlu0 %v1066_v6, %s3872_s25 }
 0xa39   :  { %1164 = vrot.lane.b32.xlu1 %v1162_v8, %s3872_s25 }
 0xaaa   :  { %v1069_v11 = vpop.permute.xlu0 %1068 }
 0xaab   :  { %v4261_v13 = vadd.f32 %v1069_v11, %v1061_v10  ;;  %v1165_v15 = vpop.permute.xlu1 %1164 }
 0xaac   :  { %v4263_v56 = vadd.f32 %v1165_v15, %v1157_v12 }
 0xaad   :  { %3710 = vtanh.f32 %v4261_v13 }
 0xaae   :  { %3712 = vtanh.f32 %v4263_v56 }
 0xab7   :  { %v3711_v18 = vpop.eup %3710 }
 0xab8   :  { %v3713_v17 = vpop.eup %3712  ;;  %1074 = vrot.lane.b32.xlu0 %v3711_v18, %s3871_s10 }
 0xab9   :  { %1170 = vrot.lane.b32.xlu1 %v3713_v17, %s3871_s10 }
 0xb2a   :  { %v1075_v19 = vpop.permute.xlu0 %1074 }
 0xb2b   :  { %v1077_v20 = vmul.f32 %v3707_v59, %v1075_v19  ;;  %v1171_v21 = vpop.permute.xlu1 %1170  ;;  %v244_v19 = vadd.f32 %v4146_v57, %v4057_v16 }
 0xb2c   :  { %v1173_v22 = vmul.f32 %v3709_v61, %v1171_v21 }
 0xb2d   :  { %1175 = vrot.lane.b32.xlu0 %v1077_v20, %s3872_s25 }
 0xb2e   :  { %1250 = vrot.lane.b32.xlu1 %v1173_v22, %s3872_s25 }
 0xb9f   :  { %v1176_v23 = vpop.permute.xlu0 %1175 }
 0xba0   :  { %v1251_v24 = vpop.permute.xlu1 %1250  ;;  %3210 = vmatmul.mubr.msk.f32.vlgmr.msra.gmra.mrb[16].mxu0 %vm127_vm1, %v1176_v23 }
 0xba1   :  { %3221 = vmatmul.mubr.msk.f32.vlgmr.msra.gmra.mrb[12].mxu1 %vm127_vm1, %v1251_v24  ;;  %3529 = vmatpush3.bf16.msra.mxu0 %v4028_v9 }
 0xba2   :  { %3530 = vmatprep.subr.bf16.mxu0 %v3868_v0  ;;  %3231 = vmatprep.mubr.msk.f32.mxu0 %vm3869_vm0, %v3870_v1 }
 0xba3   :  { %3535 = vmatpush3.bf16.msra.mxu1 %v4087_v41  ;;  %3242 = vmatprep.mubr.msk.f32.mxu1 %vm3869_vm0, %v3870_v1 }
 0xba4   :  { %3536 = vmatprep.subr.bf16.mxu1 %v3868_v0 }
 0xba5   :  { %3532 = vmatpush3.bf16.msra.mxu0 %v4041_v14 }
 0xba6   :  { %3539 = vmatprep.subr.bf16.mxu0 %v3868_v0 }
 0xba7   :  { %3538 = vmatpush3.bf16.msra.mxu1 %v4108_v47 }
 0xba8   :  { %3232 = vmatmul.mubr.msk.f32.vlgmr.msra.gmra.mrb[18].mxu0 %vm127_vm1, %v1251_v24  ;;  %3545 = vmatprep.subr.bf16.mxu1 %v3868_v0 }
 0xba9   :  { %3541 = vmatpush3.bf16.msra.mxu0 %v4076_v37  ;;  %3253 = vmatprep.mubr.msk.f32.mxu0 %vm3869_vm0, %v3870_v1 }
 0xbaa   :  { %3542 = vmatprep.subr.bf16.mxu0 %v3868_v0 }
 0xbad   :  { %3544 = vmatpush3.bf16.msra.mxu0 %v4110_v48 }
 0xbae   :  { %3551 = vmatprep.subr.bf16.mxu0 %v3868_v0 }
 0xc73   :  { %v1245_v25 = vpop.f32.mrb[16].mxu0 }
 0xc74   :  { %v1320_v26 = vpop.f32.mrb[12].mxu1  ;;  %v3211_v27 = vpop.f32.mrb[17].mxu0 }
 0xc75   :  { %v1321_v28 = vadd.f32 %v1320_v26, %v1245_v25  ;;  %v3222_v29 = vpop.f32.mrb[13].mxu1 }
 0xc77   :  { %v1324_v30 = vadd.f32 %v4173_v3, %v1321_v28 }
 0xc79   :  { %v2859_v31 = vmul.f32 -1.442695, %v1324_v30 }
 0xc7b   :  { %3714 = vpow2.f32 %v2859_v31  ;;  %v1416_v32 = vpop.f32.mrb[18].mxu0 }
 0xc7c   :  { %v1420_v35 = vadd.f32 %v1416_v32, %v239_v34  ;;  %v3233_v36 = vpop.f32.mrb[19].mxu0 }
 0xc7e   :  { %v2862_v38 = vmul.f32 -1.442695, %v1420_v35 }
 0xc80   :  { %3716 = vpow2.f32 %v2862_v38 }
 0xc85   :  { %v3715_v39 = vpop.eup %3714 }
 0xc86   :  { %v1328_v40 = vadd.f32 1.0, %v3715_v39 }
 0xc88   :  { %3718 = vrcp.f32 %v1328_v40 }
 0xc8a   :  { %v3717_v42 = vpop.eup %3716 }
 0xc8b   :  { %v1424_v33 = vadd.f32 1.0, %v3717_v42 }
 0xc8d   :  { %3720 = vrcp.f32 %v1424_v33 }
 0xc92   :  { %v3719_v43 = vpop.eup %3718 }
 0xc93   :  { %v1331_v44 = vmul.f32 2.0, %v3719_v43  ;;  %v1333_v54 = vmul.f32 %v3719_v43, %v4261_v13 }
 0xc95   :  { %v2860_v45 = vadd.f32 -1.0, %v1331_v44 }
 0xc97   :  { %v3721_v46 = vpop.eup %3720  ;;  %1335 = vrot.lane.b32.xlu0 %v2860_v45, %s3871_s10 }
 0xc98   :  { %v1427_v49 = vmul.f32 2.0, %v3721_v46  ;;  %v1429_v55 = vmul.f32 %v3721_v46, %v4263_v56 }
 0xc9a   :  { %v2863_v58 = vadd.f32 -1.0, %v1427_v49 }
 0xc9c   :  { %1431 = vrot.lane.b32.xlu1 %v2863_v58, %s3871_s10 }
 0xd09   :  { %v1336_v50 = vpop.permute.xlu0 %1335 }
 0xd0a   :  { %v1338_v51 = vmul.f32 %v3719_v43, %v1336_v50 }
 0xd0c   :  { %1340 = vrot.lane.b32.xlu0 %v1338_v51, %s3872_s25 }
 0xd0e   :  { %v1432_v52 = vpop.permute.xlu1 %1431 }
 0xd0f   :  { %v1434_v53 = vmul.f32 %v3721_v46, %v1432_v52 }
 0xd11   :  { %1436 = vrot.lane.b32.xlu1 %v1434_v53, %s3872_s25 }
 0xd7e   :  { %v1341_v59 = vpop.permute.xlu0 %1340 }
 0xd7f   :  { %v4300_v61 = vadd.f32 %v1341_v59, %v1333_v54 }
 0xd81   :  { %3722 = vtanh.f32 %v4300_v61 }
 0xd83   :  { %v1437_v63 = vpop.permute.xlu1 %1436 }
 0xd84   :  { %v4304_v2 = vadd.f32 %v1437_v63, %v1429_v55 }
 0xd86   :  { %3724 = vtanh.f32 %v4304_v2 }
 0xd8b   :  { %v3723_v4 = vpop.eup %3722 }
 0xd8c   :  { %1346 = vrot.lane.b32.xlu0 %v3723_v4, %s3871_s10 }
 0xd90   :  { %v3725_v5 = vpop.eup %3724 }
 0xd91   :  { %1442 = vrot.lane.b32.xlu1 %v3725_v5, %s3871_s10 }
 0xdfe   :  { %v1347_v6 = vpop.permute.xlu0 %1346 }
 0xdff   :  { %v1349_v7 = vmul.f32 %v3719_v43, %v1347_v6 }
 0xe01   :  { %1447 = vrot.lane.b32.xlu0 %v1349_v7, %s3872_s25  ;;  %v249_v7 = vadd.f32 %v4057_v16, %v4152_v62 }
 0xe03   :  { %v1443_v8 = vpop.permute.xlu1 %1442 }
 0xe04   :  { %v1445_v10 = vmul.f32 %v3721_v46, %v1443_v8 }
 0xe06   :  { %1522 = vrot.lane.b32.xlu1 %v1445_v10, %s3872_s25 }
 0xe73   :  { %v1448_v11 = vpop.permute.xlu0 %1447 }
 0xe74   :  { %3243 = vmatmul.mubr.msk.f32.vlgmr.msra.gmra.mrb[14].mxu1 %vm127_vm1, %v1448_v11 }
 0xe75   :  { %3547 = vmatpush3.bf16.msra.mxu1 %v4028_v9  ;;  %3264 = vmatprep.mubr.msk.f32.mxu1 %vm3869_vm0, %v3870_v1 }
 0xe76   :  { %3548 = vmatprep.subr.bf16.mxu1 %v3868_v0 }
 0xe78   :  { %v1523_v12 = vpop.permute.xlu1 %1522 }
 0xe79   :  { %3550 = vmatpush3.bf16.msra.mxu1 %v4041_v14  ;;  %3254 = vmatmul.mubr.msk.f32.vlgmr.msra.gmra.mrb[20].mxu0 %vm127_vm1, %v1523_v12 }
 0xe7a   :  { %3553 = vmatpush3.bf16.msra.mxu0 %v4087_v41  ;;  %3557 = vmatprep.subr.bf16.mxu1 %v3868_v0 }
 0xe7b   :  { %3554 = vmatprep.subr.bf16.mxu0 %v3868_v0  ;;  %3275 = vmatprep.mubr.msk.f32.mxu0 %vm3869_vm0, %v3870_v1 }
 0xe7c   :  { %3265 = vmatmul.mubr.msk.f32.vlgmr.msra.gmra.mrb[16].mxu1 %vm127_vm1, %v1523_v12 }
 0xe7d   :  { %3559 = vmatpush3.bf16.msra.mxu1 %v4076_v37  ;;  %3286 = vmatprep.mubr.msk.f32.mxu1 %vm3869_vm0, %v3870_v1 }
 0xe7e   :  { %3556 = vmatpush3.bf16.msra.mxu0 %v4108_v47  ;;  %3560 = vmatprep.subr.bf16.mxu1 %v3868_v0 }
 0xe7f   :  { %3563 = vmatprep.subr.bf16.mxu0 %v3868_v0 }
 0xe81   :  { %3562 = vmatpush3.bf16.msra.mxu1 %v4110_v48 }
 0xe82   :  { %3569 = vmatprep.subr.bf16.mxu1 %v3868_v0 }
 0xf47   :  { %v1517_v13 = vpop.f32.mrb[14].mxu1 }
 0xf48   :  { %v3244_v15 = vpop.f32.mrb[15].mxu1 }
 0xf4c   :  { %v1592_v56 = vpop.f32.mrb[20].mxu0 }
 0xf4d   :  { %v1593_v18 = vadd.f32 %v1592_v56, %v1517_v13  ;;  %v3255_v17 = vpop.f32.mrb[21].mxu0 }
 0xf4f   :  { %v1596_v20 = vadd.f32 %v4173_v3, %v1593_v18  ;;  %v1688_v21 = vpop.f32.mrb[16].mxu1 }
 0xf50   :  { %v1692_v22 = vadd.f32 %v1688_v21, %v244_v19  ;;  %v3266_v23 = vpop.f32.mrb[17].mxu1 }
 0xf51   :  { %v2866_v24 = vmul.f32 -1.442695, %v1596_v20 }
 0xf52   :  { %v2869_v25 = vmul.f32 -1.442695, %v1692_v22 }
 0xf53   :  { %3726 = vpow2.f32 %v2866_v24 }
 0xf54   :  { %3728 = vpow2.f32 %v2869_v25 }
 0xf5d   :  { %v3727_v26 = vpop.eup %3726 }
 0xf5e   :  { %v3729_v27 = vpop.eup %3728  ;;  %v1600_v28 = vadd.f32 1.0, %v3727_v26 }
 0xf5f   :  { %v1696_v29 = vadd.f32 1.0, %v3729_v27 }
 0xf60   :  { %3730 = vrcp.f32 %v1600_v28 }
 0xf61   :  { %3732 = vrcp.f32 %v1696_v29 }
 0xf6a   :  { %v3731_v30 = vpop.eup %3730 }
 0xf6b   :  { %v3733_v31 = vpop.eup %3732  ;;  %v1603_v34 = vmul.f32 2.0, %v3731_v30  ;;  %v1605_v42 = vmul.f32 %v3731_v30, %v4300_v61 }
 0xf6c   :  { %v1699_v32 = vmul.f32 2.0, %v3733_v31  ;;  %v1701_v43 = vmul.f32 %v3733_v31, %v4304_v2 }
 0xf6d   :  { %v2867_v57 = vadd.f32 -1.0, %v1603_v34 }
 0xf6e   :  { %v2870_v35 = vadd.f32 -1.0, %v1699_v32 }
 0xf6f   :  { %1607 = vrot.lane.b32.xlu0 %v2867_v57, %s3871_s10 }
 0xf70   :  { %1703 = vrot.lane.b32.xlu1 %v2870_v35, %s3871_s10 }
 0xfe1   :  { %v1608_v36 = vpop.permute.xlu0 %1607 }
 0xfe2   :  { %v1610_v38 = vmul.f32 %v3731_v30, %v1608_v36  ;;  %v1704_v39 = vpop.permute.xlu1 %1703 }
 0xfe3   :  { %v1706_v40 = vmul.f32 %v3733_v31, %v1704_v39 }
 0xfe4   :  { %1612 = vrot.lane.b32.xlu0 %v1610_v38, %s3872_s25 }
 0xfe5   :  { %1708 = vrot.lane.b32.xlu1 %v1706_v40, %s3872_s25 }
0x1056   :  { %v1613_v33 = vpop.permute.xlu0 %1612 }
0x1057   :  { %v4341_v44 = vadd.f32 %v1613_v33, %v1605_v42  ;;  %v1709_v45 = vpop.permute.xlu1 %1708 }
0x1058   :  { %v4343_v46 = vadd.f32 %v1709_v45, %v1701_v43 }
0x1059   :  { %3734 = vtanh.f32 %v4341_v44 }
0x105a   :  { %3736 = vtanh.f32 %v4343_v46 }
0x1063   :  { %v3735_v49 = vpop.eup %3734 }
0x1064   :  { %v3737_v58 = vpop.eup %3736  ;;  %1618 = vrot.lane.b32.xlu0 %v3735_v49, %s3871_s10 }
0x1065   :  { %1714 = vrot.lane.b32.xlu1 %v3737_v58, %s3871_s10 }
0x10d6   :  { %v1619_v50 = vpop.permute.xlu0 %1618 }
0x10d7   :  { %v1621_v51 = vmul.f32 %v3731_v30, %v1619_v50  ;;  %v1715_v52 = vpop.permute.xlu1 %1714 }
0x10d8   :  { %v1717_v53 = vmul.f32 %v3733_v31, %v1715_v52 }
0x10d9   :  { %1719 = vrot.lane.b32.xlu0 %v1621_v51, %s3872_s25 }
0x10da   :  { %1794 = vrot.lane.b32.xlu1 %v1717_v53, %s3872_s25 }
0x114b   :  { %v1720_v54 = vpop.permute.xlu0 %1719 }
0x114c   :  { %v1795_v59 = vpop.permute.xlu1 %1794  ;;  %3276 = vmatmul.mubr.msk.f32.vlgmr.msra.gmra.mrb[22].mxu0 %vm127_vm1, %v1720_v54 }
0x114d   :  { %3287 = vmatmul.mubr.msk.f32.vlgmr.msra.gmra.mrb[18].mxu1 %vm127_vm1, %v1795_v59  ;;  %3565 = vmatpush3.bf16.msra.mxu0 %v4028_v9 }
0x114e   :  { %3566 = vmatprep.subr.bf16.mxu0 %v3868_v0  ;;  %3297 = vmatprep.mubr.msk.f32.mxu0 %vm3869_vm0, %v3870_v1 }
0x114f   :  { %3571 = vmatpush3.bf16.msra.mxu1 %v4087_v41  ;;  %3308 = vmatprep.mubr.msk.f32.mxu1 %vm3869_vm0, %v3870_v1 }
0x1150   :  { %3572 = vmatprep.subr.bf16.mxu1 %v3868_v0 }
0x1151   :  { %3568 = vmatpush3.bf16.msra.mxu0 %v4041_v14 }
0x1152   :  { %3575 = vmatprep.subr.bf16.mxu0 %v3868_v0 }
0x1153   :  { %3574 = vmatpush3.bf16.msra.mxu1 %v4108_v47 }
0x1154   :  { %3298 = vmatmul.mubr.msk.f32.vlgmr.msra.gmra.mrb[24].mxu0 %vm127_vm1, %v1795_v59  ;;  %3581 = vmatprep.subr.bf16.mxu1 %v3868_v0 }
0x1155   :  { %3577 = vmatpush3.bf16.msra.mxu0 %v4076_v37  ;;  %3319 = vmatprep.mubr.msk.f32.mxu0 %vm3869_vm0, %v3870_v1 }
0x1156   :  { %3578 = vmatprep.subr.bf16.mxu0 %v3868_v0 }
0x1159   :  { %3580 = vmatpush3.bf16.msra.mxu0 %v4110_v48 }
0x115a   :  { %3587 = vmatprep.subr.bf16.mxu0 %v3868_v0 }
0x121f   :  { %v1789_v61 = vpop.f32.mrb[22].mxu0 }
0x1220   :  { %v1864_v55 = vpop.f32.mrb[18].mxu1  ;;  %v3277_v63 = vpop.f32.mrb[23].mxu0 }
0x1221   :  { %v1865_v2 = vadd.f32 %v1864_v55, %v1789_v61  ;;  %v3288_v4 = vpop.f32.mrb[19].mxu1 }
0x1223   :  { %v1868_v5 = vadd.f32 %v4173_v3, %v1865_v2 }
0x1225   :  { %v2873_v6 = vmul.f32 -1.442695, %v1868_v5 }
0x1227   :  { %3738 = vpow2.f32 %v2873_v6  ;;  %v1960_v8 = vpop.f32.mrb[24].mxu0 }
0x1228   :  { %v1964_v10 = vadd.f32 %v1960_v8, %v249_v7  ;;  %v3299_v11 = vpop.f32.mrb[25].mxu0 }
0x122a   :  { %v2876_v12 = vmul.f32 -1.442695, %v1964_v10 }
0x122c   :  { %3740 = vpow2.f32 %v2876_v12 }
0x1231   :  { %v3739_v13 = vpop.eup %3738 }
0x1232   :  { %v1872_v15 = vadd.f32 1.0, %v3739_v13 }
0x1234   :  { %3742 = vrcp.f32 %v1872_v15 }
0x1236   :  { %v3741_v56 = vpop.eup %3740 }
0x1237   :  { %v1968_v18 = vadd.f32 1.0, %v3741_v56 }
0x1239   :  { %3744 = vrcp.f32 %v1968_v18 }
0x123e   :  { %v3743_v17 = vpop.eup %3742 }
0x123f   :  { %v1875_v19 = vmul.f32 2.0, %v3743_v17  ;;  %v1877_v26 = vmul.f32 %v3743_v17, %v4341_v44 }
0x1241   :  { %v2874_v20 = vadd.f32 -1.0, %v1875_v19 }
0x1243   :  { %v3745_v21 = vpop.eup %3744  ;;  %1879 = vrot.lane.b32.xlu0 %v2874_v20, %s3871_s10 }
0x1244   :  { %v1971_v22 = vmul.f32 2.0, %v3745_v21  ;;  %v1973_v29 = vmul.f32 %v3745_v21, %v4343_v46 }
0x1246   :  { %v2877_v16 = vadd.f32 -1.0, %v1971_v22 }
0x1248   :  { %1975 = vrot.lane.b32.xlu1 %v2877_v16, %s3871_s10 }
0x12b5   :  { %v1880_v62 = vpop.permute.xlu0 %1879 }
0x12b6   :  { %v1882_v23 = vmul.f32 %v3743_v17, %v1880_v62 }
0x12b8   :  { %1884 = vrot.lane.b32.xlu0 %v1882_v23, %s3872_s25 }
0x12ba   :  { %v1976_v24 = vpop.permute.xlu1 %1975 }
0x12bb   :  { %v1978_v25 = vmul.f32 %v3745_v21, %v1976_v24 }
0x12bd   :  { %1980 = vrot.lane.b32.xlu1 %v1978_v25, %s3872_s25 }
0x132a   :  { %v1885_v27 = vpop.permute.xlu0 %1884 }
0x132b   :  { %v4380_v28 = vadd.f32 %v1885_v27, %v1877_v26 }
0x132d   :  { %3746 = vtanh.f32 %v4380_v28 }
0x132f   :  { %v1981_v30 = vpop.permute.xlu1 %1980 }
0x1330   :  { %v4384_v31 = vadd.f32 %v1981_v30, %v1973_v29 }
0x1332   :  { %3748 = vtanh.f32 %v4384_v31 }
0x1337   :  { %v3747_v34 = vpop.eup %3746 }
0x1338   :  { %1890 = vrot.lane.b32.xlu0 %v3747_v34, %s3871_s10 }
0x133c   :  { %v3749_v32 = vpop.eup %3748 }
0x133d   :  { %1986 = vrot.lane.b32.xlu1 %v3749_v32, %s3871_s10 }
0x13aa   :  { %v1891_v57 = vpop.permute.xlu0 %1890 }
0x13ab   :  { %v1893_v35 = vmul.f32 %v3743_v17, %v1891_v57 }
0x13ad   :  { %1991 = vrot.lane.b32.xlu0 %v1893_v35, %s3872_s25 }
0x13af   :  { %v1987_v36 = vpop.permute.xlu1 %1986 }
0x13b0   :  { %v1989_v38 = vmul.f32 %v3745_v21, %v1987_v36 }
0x13b2   :  { %2066 = vrot.lane.b32.xlu1 %v1989_v38, %s3872_s25  ;;  %v2453_v38 = vld [vmem:[#allocation5] sm:$0xff] }
0x141f   :  { %v1992_v39 = vpop.permute.xlu0 %1991 }
0x1420   :  { %3309 = vmatmul.mubr.msk.f32.vlgmr.msra.gmra.mrb[20].mxu1 %vm127_vm1, %v1992_v39  ;;  %v2531_v39 = vld [vmem:[#allocation7] sm:$0xff] }
0x1421   :  { %3583 = vmatpush3.bf16.msra.mxu1 %v4028_v9  ;;  %3330 = vmatprep.mubr.msk.f32.mxu1 %vm3869_vm0, %v3870_v1 }
0x1422   :  { %3584 = vmatprep.subr.bf16.mxu1 %v3868_v0 }
0x1424   :  { %v2067_v40 = vpop.permute.xlu1 %2066 }
0x1425   :  { %3586 = vmatpush3.bf16.msra.mxu1 %v4041_v14  ;;  %3320 = vmatmul.mubr.msk.f32.vlgmr.msra.gmra.mrb[26].mxu0 %vm127_vm1, %v2067_v40 }
0x1426   :  { %3593 = vmatprep.subr.bf16.mxu1 %v3868_v0  ;;  %3589 = vmatpush3.bf16.msra.mxu0 %v4087_v41 }
0x1427   :  { %3590 = vmatprep.subr.bf16.mxu0 %v3868_v0  ;;  %3341 = vmatprep.mubr.msk.f32.mxu0 %vm3869_vm0, %v3870_v1 }
0x1428   :  { %3331 = vmatmul.mubr.msk.f32.vlgmr.msra.gmra.mrb[22].mxu1 %vm127_vm1, %v2067_v40 }
0x1429   :  { %3595 = vmatpush3.bf16.msra.mxu1 %v4076_v37  ;;  %3352 = vmatprep.mubr.msk.f32.mxu1 %vm3869_vm0, %v3870_v1  ;;  %v3768_v37 = vld [vmem:[%s4590_s5] ss:$0 sm:$0xff] }
0x142a   :  { %3596 = vmatprep.subr.bf16.mxu1 %v3868_v0  ;;  %3592 = vmatpush3.bf16.msra.mxu0 %v4108_v47  ;;  %v254_v43 = vadd.f32 %v3768_v37, %v4150_v60  ;;  %v2534_v37 = vld [vmem:[#allocation7 + $0x18] sm:$0xff] }
0x142b   :  { %3599 = vmatprep.subr.bf16.mxu0 %v3868_v0 }
0x142d   :  { %3598 = vmatpush3.bf16.msra.mxu1 %v4110_v48 }
0x142e   :  { %3605 = vmatprep.subr.bf16.mxu1 %v3868_v0 }
0x14f3   :  { %v2061_v9 = vpop.f32.mrb[20].mxu1 }
0x14f4   :  { %v3310_v14 = vpop.f32.mrb[21].mxu1 }
0x14f5   :  { %v2455_v14 = vld [vmem:[#allocation5 + $0x10] sm:$0xff] }
0x14f8   :  { %v2136_v41 = vpop.f32.mrb[26].mxu0 }
0x14f9   :  { %v2137_v42 = vadd.f32 %v2136_v41, %v2061_v9  ;;  %v3321_v33 = vpop.f32.mrb[27].mxu0  ;;  %v2532_v9 = vld [vmem:[#allocation7 + $0x8] sm:$0xff]  ;;  %v2456_v41 = vld [vmem:[#allocation5 + $0x18] sm:$0xff] }
0x14fa   :  { %v2533_v33 = vld [vmem:[#allocation7 + $0x10] sm:$0xff] }
0x14fb   :  { %v2140_v44 = vadd.f32 %v4173_v3, %v2137_v42  ;;  %v2232_v47 = vpop.f32.mrb[22].mxu1  ;;  %v3606_v42 = vpack.c.bf16 %v2532_v9, %v2531_v39 }
0x14fc   :  { %v2236_v45 = vadd.f32 %v2232_v47, %v254_v43  ;;  %v3332_v46 = vpop.f32.mrb[23].mxu1  ;;  %v3603_v43 = vpack.c.bf16 %v2456_v41, %v2455_v14  ;;  %v2452_v47 = vld [vmem:[#allocation2] sm:$0xff] }
0x14fd   :  { %v2880_v49 = vmul.f32 -1.442695, %v2140_v44  ;;  %v3609_v44 = vpack.c.bf16 %v2534_v37, %v2533_v33  ;;  %v2438_v46 = vld [vmem:[%s4587_s2] sm:$0xff] }
0x14fe   :  { %v2883_v48 = vmul.f32 -1.442695, %v2236_v45  ;;  %v2892_v33 = vld [vmem:[%s4597_s12] ss:$0 sm:$0xff] }
0x14ff   :  { %3750 = vpow2.f32 %v2880_v49  ;;  %v2620_v49 = vld [vmem:[%s4598_s13] sm:$0xff] }
0x1500   :  { %3752 = vpow2.f32 %v2883_v48  ;;  %v2621_v48 = vld [vmem:[%s4598_s13 + $0x8] sm:$0xff] }
0x1509   :  { %v3751_v58 = vpop.eup %3750 }
0x150a   :  { %v3753_v50 = vpop.eup %3752  ;;  %v2144_v51 = vadd.f32 1.0, %v3751_v58  ;;  %v3873_v58 = vmov 0  }
0x150b   :  { %v2240_v52 = vadd.f32 1.0, %v3753_v50  ;;  %3671 = vset.pattern.permute.xlu0 %v3873_v58  ;;  %v3612_v50 = vpack.c.bf16 %v2621_v48, %v2620_v49  ;;  %v2893_v49 = vld [vmem:[%s4599_s14] ss:$0 sm:$0xff] }
0x150c   :  { %3754 = vrcp.f32 %v2144_v51  ;;  %v2622_v51 = vld [vmem:[%s4598_s13 + $0x10] sm:$0xff] }
0x150d   :  { %3756 = vrcp.f32 %v2240_v52  ;;  %v2623_v52 = vld [vmem:[%s4598_s13 + $0x18] sm:$0xff] }
0x1516   :  { %v3755_v53 = vpop.eup %3754 }
0x1517   :  { %v3757_v54 = vpop.eup %3756  ;;  %v2147_v59 = vmul.f32 2.0, %v3755_v53  ;;  %v2149_v6 = vmul.f32 %v3755_v53, %v4380_v28 }
0x1518   :  { %v2243_v61 = vmul.f32 2.0, %v3757_v54  ;;  %v2245_v8 = vmul.f32 %v3757_v54, %v4384_v31 }
0x1519   :  { %v2881_v60 = vadd.f32 -1.0, %v2147_v59  ;;  %v2625_v59 = vld [vmem:[%s4598_s13 + $0x28] sm:$0xff] }
0x151a   :  { %v2884_v55 = vadd.f32 -1.0, %v2243_v61 }
0x151b   :  { %2151 = vrot.lane.b32.xlu0 %v2881_v60, %s3871_s10  ;;  %v2626_v60 = vld [vmem:[%s4598_s13 + $0x30] sm:$0xff] }
0x151c   :  { %2247 = vrot.lane.b32.xlu1 %v2884_v55, %s3871_s10  ;;  %v2627_v55 = vld [vmem:[%s4598_s13 + $0x38] sm:$0xff] }
0x158d   :  { %v2152_v63 = vpop.permute.xlu0 %2151 }
0x158e   :  { %v2154_v2 = vmul.f32 %v3755_v53, %v2152_v63  ;;  %v2248_v4 = vpop.permute.xlu1 %2247 }
0x158f   :  { %v2250_v5 = vmul.f32 %v3757_v54, %v2248_v4  ;;  %v3621_v4 = vpack.c.bf16 %v2627_v55, %v2626_v60 }
0x1590   :  { %2156 = vrot.lane.b32.xlu0 %v2154_v2, %s3872_s25 }
0x1591   :  { %2252 = vrot.lane.b32.xlu1 %v2250_v5, %s3872_s25  ;;  %v2628_v5 = vld [vmem:[%s4598_s13 + $0x40] sm:$0xff] }
0x1602   :  { %v2157_v7 = vpop.permute.xlu0 %2156 }
0x1603   :  { %v2159_v10 = vadd.f32 %v2157_v7, %v2149_v6  ;;  %v2253_v11 = vpop.permute.xlu1 %2252  ;;  %v2629_v6 = vld [vmem:[%s4598_s13 + $0x48] sm:$0xff] }
0x1604   :  { %v2255_v12 = vadd.f32 %v2253_v11, %v2245_v8  ;;  %v3624_v7 = vpack.c.bf16 %v2629_v6, %v2628_v5  ;;  %v2630_v8 = vld [vmem:[%s4598_s13 + $0x50] sm:$0xff] }
0x1605   :  { %3758 = vtanh.f32 %v2159_v10 }
0x1606   :  { %3760 = vtanh.f32 %v2255_v12 }
0x160f   :  { %v3759_v13 = vpop.eup %3758 }
0x1610   :  { %v3761_v15 = vpop.eup %3760  ;;  %2162 = vrot.lane.b32.xlu0 %v3759_v13, %s3871_s10 }
0x1611   :  { %2258 = vrot.lane.b32.xlu1 %v3761_v15, %s3871_s10 }
0x1682   :  { %v2163_v56 = vpop.permute.xlu0 %2162 }
0x1683   :  { %v2165_v18 = vmul.f32 %v3755_v53, %v2163_v56  ;;  %v2259_v17 = vpop.permute.xlu1 %2258  ;;  %v3615_v53 = vpack.c.bf16 %v2623_v52, %v2622_v51  ;;  %v2632_v56 = vld [vmem:[%s4598_s13 + $0x60] sm:$0xff] }
0x1684   :  { %v2261_v19 = vmul.f32 %v3757_v54, %v2259_v17  ;;  %v2624_v54 = vld [vmem:[%s4598_s13 + $0x20] sm:$0xff] }
0x1685   :  { %2263 = vrot.lane.b32.xlu0 %v2165_v18, %s3872_s25  ;;  %v3618_v61 = vpack.c.bf16 %v2625_v59, %v2624_v54  ;;  %v2633_v18 = vld [vmem:[%s4598_s13 + $0x68] sm:$0xff]  ;;  %v2894_v52 = vld [vmem:[%s4612_s6] ss:$0 sm:$0xff] }
0x1686   :  { %2338 = vrot.lane.b32.xlu1 %v2261_v19, %s3872_s25  ;;  %v3630_v17 = vpack.c.bf16 %v2633_v18, %v2632_v56  ;;  %v2634_v19 = vld [vmem:[%s4598_s13 + $0x70] sm:$0xff] }
0x16f7   :  { %v2264_v20 = vpop.permute.xlu0 %2263 }
0x16f8   :  { %v2339_v21 = vpop.permute.xlu1 %2338  ;;  %3342 = vmatmul.mubr.msk.f32.vlgmr.msra.gmra.mrb[28].mxu0 %vm127_vm1, %v2264_v20 }
0x16f9   :  { %3353 = vmatmul.mubr.msk.f32.vlgmr.msra.gmra.mrb[24].mxu1 %vm127_vm1, %v2339_v21  ;;  %3363 = vmatprep.mubr.msk.f32.mxu0 %vm3869_vm0, %v3870_v1  ;;  %v2714_v21 = vld [vmem:[%s4600_s15] sm:$0xff] }
0x16fa   :  { %3374 = vmatprep.mubr.msk.f32.mxu1 %vm3869_vm0, %v3870_v1  ;;  %3607 = vmatpush3.bf16.msra.mxu1 %v3606_v42 }
0x16fb   :  { %3608 = vmatprep.subr.bf16.mxu1 %v3868_v0 }
0x16fe   :  { %3610 = vmatpush3.bf16.msra.mxu1 %v3609_v44 }
0x16ff   :  { %3635 = vmatprep.subr.bf16.mxu1 %v3868_v0 }
0x17cb   :  { %v2333_v22 = vpop.f32.mrb[28].mxu0 }
0x17cc   :  { %v2408_v16 = vpop.f32.mrb[24].mxu1  ;;  %v3343_v62 = vpop.f32.mrb[29].mxu0 }
0x17cd   :  { %v2409_v23 = vadd.f32 %v2408_v16, %v2333_v22  ;;  %v3354_v24 = vpop.f32.mrb[25].mxu1  ;;  %v2715_v22 = vld [vmem:[%s4600_s15 + $0x8] sm:$0xff]  ;;  %v2716_v16 = vld [vmem:[%s4600_s15 + $0x10] sm:$0xff] }
0x17ce   :  { %v3636_v62 = vpack.c.bf16 %v2715_v22, %v2714_v21 }
0x17cf   :  { %v2412_v25 = vadd.f32 %v4173_v3, %v2409_v23  ;;  %v2454_v3 = vld [vmem:[#allocation5 + $0x8] sm:$0xff]  ;;  %v2717_v23 = vld [vmem:[%s4600_s15 + $0x18] sm:$0xff] }
0x17d0   :  { %v3600_v40 = vpack.c.bf16 %v2454_v3, %v2453_v38  ;;  %v3639_v24 = vpack.c.bf16 %v2717_v23, %v2716_v16  ;;  %v2726_v38 = vld [vmem:[%s4600_s15 + $0x60] sm:$0xff]  ;;  %v2727_v3 = vld [vmem:[%s4600_s15 + $0x68] sm:$0xff] }
0x17d1   :  { %v2887_v26 = vmul.f32 -1.442695, %v2412_v25  ;;  %v2718_v25 = vld [vmem:[%s4600_s15 + $0x20] sm:$0xff]  ;;  %v3654_v39 = vpack.c.bf16 %v2727_v3, %v2726_v38 }
0x17d2   :  { %3601 = vmatpush3.bf16.msra.mxu0 %v3600_v40  ;;  %v2889_v40 = vld [vmem:[%s4594_s9] ss:$0 sm:$0xff] }
0x17d3   :  { %3762 = vpow2.f32 %v2887_v26  ;;  %3602 = vmatprep.subr.bf16.mxu0 %v3868_v0  ;;  %v2719_v26 = vld [vmem:[%s4600_s15 + $0x28] sm:$0xff] }
0x17d6   :  { %3604 = vmatpush3.bf16.msra.mxu0 %v3603_v43 }
0x17d7   :  { %3611 = vmatprep.subr.bf16.mxu0 %v3868_v0 }
0x17d9   :  { %3364 = vmatmul.mubr.msk.f32.vlgmr.msra.gmra.mrb[30].mxu0 %vm127_vm1, %v2452_v47 }
0x17da   :  { %3409 = vmatprep.mubr.msk.f32.mxu0 %vm3869_vm0, %v3870_v1  ;;  %3613 = vmatpush3.bf16.msra.mxu0 %v3612_v50 }
0x17db   :  { %3614 = vmatprep.subr.bf16.mxu0 %v3868_v0 }
0x17dd   :  { %v3763_v27 = vpop.eup %3762 }
0x17de   :  { %v2416_v28 = vadd.f32 1.0, %v3763_v27  ;;  %3616 = vmatpush3.bf16.msra.mxu0 %v3615_v53  ;;  %v3642_v27 = vpack.c.bf16 %v2719_v26, %v2718_v25 }
0x17df   :  { %3617 = vmatprep.subr.bf16.mxu0 %v3868_v0 }
0x17e0   :  { %3764 = vrcp.f32 %v2416_v28  ;;  %v2720_v28 = vld [vmem:[%s4600_s15 + $0x30] sm:$0xff] }
0x17e2   :  { %3619 = vmatpush3.bf16.msra.mxu0 %v3618_v61 }
0x17e3   :  { %3620 = vmatprep.subr.bf16.mxu0 %v3868_v0 }
0x17e6   :  { %3622 = vmatpush3.bf16.msra.mxu0 %v3621_v4 }
0x17e7   :  { %3623 = vmatprep.subr.bf16.mxu0 %v3868_v0 }
0x17ea   :  { %v3765_v29 = vpop.eup %3764  ;;  %3625 = vmatpush3.bf16.msra.mxu0 %v3624_v7 }
0x17eb   :  { %v2419_v30 = vmul.f32 2.0, %v3765_v29  ;;  %v2421_v57 = vmul.f32 %v3765_v29, %v2159_v10  ;;  %v2631_v10 = vld [vmem:[%s4598_s13 + $0x58] sm:$0xff]  ;;  %3626 = vmatprep.subr.bf16.mxu0 %v3868_v0 }
0x17ec   :  { %v3627_v11 = vpack.c.bf16 %v2631_v10, %v2630_v8 }
0x17ed   :  { %v2888_v31 = vadd.f32 -1.0, %v2419_v30 }
0x17ee   :  { %3628 = vmatpush3.bf16.msra.mxu0 %v3627_v11 }
0x17ef   :  { %2423 = vrot.lane.b32.xlu0 %v2888_v31, %s3871_s10  ;;  %3629 = vmatprep.subr.bf16.mxu0 %v3868_v0  ;;  %v2722_v31 = vld [vmem:[%s4600_s15 + $0x40] sm:$0xff] }
0x17f2   :  { %3631 = vmatpush3.bf16.msra.mxu0 %v3630_v17 }
0x17f3   :  { %3632 = vmatprep.subr.bf16.mxu0 %v3868_v0 }
0x1861   :  { %v2424_v34 = vpop.permute.xlu0 %2423 }
0x1862   :  { %v2426_v32 = vmul.f32 %v3765_v29, %v2424_v34  ;;  %v2723_v34 = vld [vmem:[%s4600_s15 + $0x48] sm:$0xff] }
0x1864   :  { %2428 = vrot.lane.b32.xlu1 %v2426_v32, %s3872_s25  ;;  %v3648_v32 = vpack.c.bf16 %v2723_v34, %v2722_v31 }
0x18ac   :  { %v2526_v12 = vpop.f32.mrb[30].mxu0 }
0x18ad   :  { %v3365_v13 = vpop.f32.mrb[31].mxu0 }
0x18d6   :  { %v2429_v35 = vpop.permute.xlu1 %2428 }
0x18d7   :  { %v2431_v36 = vadd.f32 %v2429_v35, %v2421_v57  ;;  %v2724_v57 = vld [vmem:[%s4600_s15 + $0x50] sm:$0xff]  ;;  %v2725_v35 = vld [vmem:[%s4600_s15 + $0x58] sm:$0xff] }
0x18d9   :  { %3766 = vtanh.f32 %v2431_v36  ;;  %v3651_v36 = vpack.c.bf16 %v2725_v35, %v2724_v57 }
0x18e3   :  { %v3767_v45 = vpop.eup %3766 }
0x18e4   :  { %2434 = vrot.lane.b32.xlu0 %v3767_v45, %s3871_s10  ;;  %v2729_v45 = vld [vmem:[%s4600_s15 + $0x78] sm:$0xff] }
0x18e8   :  { %2442 = vperm.xlu0 %3671, %v2438_v46  }
0x1956   :  { %v2435_v63 = vpop.permute.xlu0 %2434 }
0x1957   :  { %v2437_v2 = vmul.f32 %v3765_v29, %v2435_v63  ;;  %v2721_v29 = vld [vmem:[%s4600_s15 + $0x38] sm:$0xff] }
0x1958   :  { %v3645_v30 = vpack.c.bf16 %v2721_v29, %v2720_v28 }
0x1959   :  { %2536 = vrot.lane.b32.xlu1 %v2437_v2, %s3872_s25 }
0x1967   :  { %v2443_v9 = vpop.permute.xlu0 %2442 }
0x1968   :  { %v2451_v14 = vmul.f32 %v2889_v40, %v2443_v9 }
0x196a   :  { %v2530_v41 = vadd.f32 %v2526_v12, %v2451_v14 }
0x19cb   :  { %v2537_v15 = vpop.permute.xlu1 %2536 }
0x19cc   :  { %3375 = vmatmul.mubr.msk.f32.vlgmr.msra.gmra.mrb[26].mxu1 %vm127_vm1, %v2537_v15 }
0x19cd   :  { %3444 = vmatprep.mubr.msk.f32.mxu1 %vm3869_vm0, %v3870_v1  ;;  %v2635_v1 = vld [vmem:[%s4598_s13 + $0x78] sm:$0xff]  ;;  %3637 = vmatpush3.bf16.msra.mxu1 %v3636_v62 }
0x19ce   :  { %v3633_v20 = vpack.c.bf16 %v2635_v1, %v2634_v19  ;;  %3638 = vmatprep.subr.bf16.mxu1 %v3868_v0 }
0x19d0   :  { %3634 = vmatpush3.bf16.msra.mxu0 %v3633_v20 }
0x19d1   :  { %3640 = vmatpush3.bf16.msra.mxu1 %v3639_v24 }
0x19d2   :  { %3641 = vmatprep.subr.bf16.mxu1 %v3868_v0 }
0x19d5   :  { %3643 = vmatpush3.bf16.msra.mxu1 %v3642_v27 }
0x19d6   :  { %3644 = vmatprep.subr.bf16.mxu1 %v3868_v0 }
0x19d9   :  { %3646 = vmatpush3.bf16.msra.mxu1 %v3645_v30 }
0x19da   :  { %3647 = vmatprep.subr.bf16.mxu1 %v3868_v0 }
0x19dd   :  { %3649 = vmatpush3.bf16.msra.mxu1 %v3648_v32 }
0x19de   :  { %3650 = vmatprep.subr.bf16.mxu1 %v3868_v0 }
0x19e1   :  { %3652 = vmatpush3.bf16.msra.mxu1 %v3651_v36 }
0x19e2   :  { %3653 = vmatprep.subr.bf16.mxu1 %v3868_v0 }
0x19e5   :  { %3655 = vmatpush3.bf16.msra.mxu1 %v3654_v39 }
0x19e6   :  { %3656 = vmatprep.subr.bf16.mxu1 %v3868_v0  ;;  %v2728_v0 = vld [vmem:[%s4600_s15 + $0x70] sm:$0xff]  ;;  %s3835_s15 = scalar_lea.vmem %s2816_s26, 128 }
0x19e7   :  { %v3657_v46 = vpack.c.bf16 %v2729_v45, %v2728_v0  ;;  %p3836_p10 = scmp.ne.s32.totalorder %s2816_s26, %s3835_s15  ;;  %p3841_p12 = scmp.lt.s32.totalorder %s3835_s15, %s3835_s15 }
0x19e9   :  { %3658 = vmatpush3.bf16.msra.mxu1 %v3657_v46  ;;  %p3842_p13 = por %p3841_p12, %p3840_p11 }
0x19eb   :  { %p3843_p0 = pnand %p3842_p13, %p3836_p10 }
0x1a9f   :  { %v2606_v42 = vpop.f32.mrb[26].mxu1 }
0x1aa0   :  { %v2610_v37 = vadd.f32 %v2606_v42, %v2530_v41  ;;  %v3376_v43 = vpop.f32.mrb[27].mxu1 }
0x1aa2   :  { %v2618_v44 = vadd.f32 %v2892_v33, %v2610_v37 }
0x1aa4   :  { %v2619_v47 = vmax.f32 %v2618_v44, 0.0 }
0x1aa6   :  { %3410 = vmatmul.mubr.f32.vlgmr.msra.gmra.mrb[32].mxu0 %v2619_v47 }
0x1b79   :  { %v2709_v48 = vpop.f32.mrb[32].mxu0 }
0x1b7a   :  { %v2710_v58 = vadd.f32 %v2893_v49, %v2709_v48  ;;  %v3411_v50 = vpop.f32.mrb[33].mxu0 }
0x1b7c   :  { %v2713_v51 = vmax.f32 %v2710_v58, 0.0 }
0x1b7e   :  { %3445 = vmatmul.mubr.f32.vlgmr.msra.gmra.mrb[28].mxu1 %v2713_v51 }
0x1c51   :  { %v2803_v53 = vpop.f32.mrb[28].mxu1 }
0x1c52   :  { %v2804_v54 = vadd.f32 %v2894_v52, %v2803_v53  ;;  %v3446_v59 = vpop.f32.mrb[29].mxu1 }
0x1c54   :  { %2808 = vst.msk [vmem:[#allocation8] sm:$0xff] %vm2807_vm2, %v2804_v54 }
0x1c55   :  { %3846 = shalt.err (!%p3843_p0)
}
0x1c56   :  { %s4613_s16 = sld [smem:[#allocation15_spill]] }
0x1c5c   :  { %s3847_s8 = scalar_lea.hbm %s4613_s16, 128 }
0x1c5d   :  { %p3848_p1 = scmp.ne.s32.totalorder %s4613_s16, %s3847_s8  ;;  %p3851_p2 = scmp.lt.u32.totalorder %s3847_s8, %s4613_s16 }
0x1c5f   :  { %p3853_p3 = pnand %p3851_p2, %p3848_p1 }
0x1c61   :  { %3856 = shalt.err (!%p3853_p3)
}
0x1c62   :  { %2818 = dma.vmem_to_hbm [thread:$0]  %s2816_s26, 128, %s4613_s16, [#allocation4]  }
0x1c63   :  { %3861 = dma.done.wait [#allocation4], 128  }
0x1c64   :  { %3862 = vsyncadd [#allocation4], 4294967168 }
0x1c65   :  { %2822 = vsyncpa [#allocation3], 1 }
0x1c66   :  { %2823 = vsyncpa [#allocation6], 1 }
0x1c67   :  { %2824 = vsyncpa [#allocation4], 1 }

</bundles_post_ra>
